<compile_context>
chip_gen: v6e
topology: v6e:2x2x1
jax: 0.10.0
libtpu: 0.0.40
codegen_flags: <defaults>
</compile_context>

<pallas_src>
import functools

import jax
import jax.numpy as jnp
import numpy as np
from jax.experimental import pallas as pl
from jax.experimental.pallas import tpu as pltpu


def _transformer_layer_kernel(
    x_ref, cos_ref, sin_ref,
    g_ref, beta_ref,
    wq_ref, bq_ref, wk_ref, bk_ref, wv_ref, bv_ref, wo_ref, bo_ref,
    w1_ref, b1_ref, w2_ref, b2_ref, w3_ref, b3_ref,
    o_ref,
    xn_s, kr_s, v_s, oh_s,
    *, qheads, kvheads, head_size, tq, eps,
):
    half = head_size // 2
    scale = qheads // kvheads
    inv_dk = 1.0 / float(np.sqrt(float(head_size)))
    bf16 = jnp.bfloat16

    qt = pl.program_id(1)

    g = g_ref[0]        # (D,)
    beta = beta_ref[0]  # (D,)

    def layer_norm(v):
        # two-pass variance (matches nn.LayerNorm; avoids E[x^2]-mu^2 cancellation)
        mu = jnp.mean(v, axis=-1, keepdims=True)
        c = v - mu
        var = jnp.mean(c * c, axis=-1, keepdims=True)
        return c * jax.lax.rsqrt(var + eps) * g + beta

    def mxu(a, b):
        # both operands bf16; f32 accumulation on the MXU
        return jnp.dot(a, b, preferred_element_type=jnp.float32)

    # ------- per-batch prologue: LN(x), lane-packed rotated K, and V (built once) -------
    @pl.when(qt == 0)
    def _():
        xnb = layer_norm(x_ref[0]).astype(bf16)              # (S, D)
        xn_s[...] = xnb                                      # re-used by every q tile
        k = mxu(xnb, wk_ref[...]) + bk_ref[0]                # (S, kvH*hs) f32
        v = mxu(xnb, wv_ref[...]) + bv_ref[0]                # (S, kvH*hs) f32
        kw = kvheads * half
        ck = cos_ref[:, :kw]                                 # (S, kvH*half)
        sk = sin_ref[:, :kw]
        k1 = k[:, :kw]
        k2 = k[:, kw:]
        k1r = k1 * ck - k2 * sk                              # lane-dense RoPE, all kv heads
        k2r = k1 * sk + k2 * ck
        for h in range(kvheads):
            kr_s[h] = jnp.concatenate(
                [k1r[:, h * half:(h + 1) * half],
                 k2r[:, h * half:(h + 1) * half]], axis=-1).astype(bf16)
            v_s[h] = v[:, h * head_size:(h + 1) * head_size].astype(bf16)

    # ------- per query-tile work ---------------------------------------------------------
    row0 = pl.multiple_of(qt * tq, tq)
    xq = x_ref[0, pl.ds(row0, tq), :]                        # (TQ, D) f32, for residual
    xnq = xn_s[pl.ds(row0, tq), :]                           # (TQ, D) bf16, LN reused
    cq = cos_ref[pl.ds(row0, tq), :]                         # (TQ, qH*half)
    sq = sin_ref[pl.ds(row0, tq), :]

    q = mxu(xnq, wq_ref[...]) + bq_ref[0]                    # (TQ, qH*hs) f32
    qw = qheads * half
    q1 = q[:, :qw]
    q2 = q[:, qw:]
    q1r = (q1 * cq - q2 * sq).astype(bf16)                   # lane-dense RoPE, all q heads
    q2r = (q1 * sq + q2 * cq).astype(bf16)

    # GQA: one full-depth QK matmul and one PV matmul per kv group (q heads stacked on the
    # sublane axis); per-head outputs land in the lane-packed oh_s scratch so Wo is one dot.
    # TODO(synk): switch to lax.fori_loop over a head-major layout for very large head counts.
    for kv in range(kvheads):
        heads = range(kv * scale, (kv + 1) * scale)
        q_grp = jnp.concatenate(
            [jnp.concatenate([q1r[:, h * half:(h + 1) * half],
                              q2r[:, h * half:(h + 1) * half]], axis=-1)
             for h in heads], axis=0)                        # (scale*TQ, hs) bf16
        s = jax.lax.dot_general(q_grp, kr_s[kv], (((1,), (1,)), ((), ())),
                                preferred_element_type=jnp.float32) * inv_dk
        s = s - jnp.max(s, axis=-1, keepdims=True)
        p = jnp.exp(s)                                       # f32 exp (v5e-safe)
        denom = jnp.sum(p, axis=-1, keepdims=True)
        pv = mxu(p.astype(bf16), v_s[kv])                    # (scale*TQ, hs) unnormalized
        pv = pv * pl.reciprocal(denom, approx=True)          # deferred softmax normalization
        for j, h in enumerate(heads):
            oh_s[:, h * head_size:(h + 1) * head_size] = (
                pv[j * tq:(j + 1) * tq, :].astype(bf16))

    att = mxu(oh_s[...], wo_ref[...]) + bo_ref[0]            # single fused Wo matmul
    y = att + xq                                             # residual 1

    # ------- MLP (SwiGLU), shared LayerNorm params ---------------------------------------
    yn = layer_norm(y).astype(bf16)
    h1 = mxu(yn, w1_ref[...]) + b1_ref[0]
    h2 = mxu(yn, w2_ref[...]) + b2_ref[0]
    gated = (h1 * (h2 * jax.nn.sigmoid(h2))).astype(bf16)
    m = mxu(gated, w3_ref[...]) + b3_ref[0]
    o_ref[0] = (m + y).astype(o_ref.dtype)                   # residual 2


def transformer_layer_pallas(x, freqs_cos, freqs_sin, params, *, qheads, kvheads):
    bs, seq, dim = x.shape
    head_size = dim // qheads
    half = head_size // 2
    hide_dim = params["w1"].shape[0]

    # query-tile size: prefer large 128-multiple tiles; fall back to full seq.
    # TODO(synk): pad seq to a multiple of 128 (and mask tail rows) for production seq lens.
    tq = seq
    for cand in (256, 128):
        if seq % cand == 0:
            tq = cand
            break
    n_qt = seq // tq

    # global [all heads' even features | all heads' odd features] permutation so RoPE runs
    # lane-dense across every head (q.k invariant under the shared permutation).
    def rope_perm(nheads):
        ev = np.concatenate([h * head_size + np.arange(0, head_size, 2)
                             for h in range(nheads)])
        od = np.concatenate([h * head_size + np.arange(1, head_size, 2)
                             for h in range(nheads)])
        return np.concatenate([ev, od])

    perm_q = rope_perm(qheads)
    perm_k = rope_perm(kvheads)

    bf16 = jnp.bfloat16
    f32 = jnp.float32
    wq = params["wq"][perm_q, :].T.astype(bf16)      # (D, qH*hs)
    bq = params["bq"][perm_q][None, :].astype(f32)
    wk = params["wk"][perm_k, :].T.astype(bf16)
    bk = params["bk"][perm_k][None, :].astype(f32)
    wv = params["wv"].T.astype(bf16)
    bv = params["bv"][None, :].astype(f32)
    wo = params["wo"].T.astype(bf16)                 # (qH*hs, D), original head order
    bo = params["bo"][None, :].astype(f32)
    w1 = params["w1"].T.astype(bf16)
    b1 = params["b1"][None, :].astype(f32)
    w2 = params["w2"].T.astype(bf16)
    b2 = params["b2"][None, :].astype(f32)
    w3 = params["w3"].T.astype(bf16)
    b3 = params["b3"][None, :].astype(f32)
    g = params["ln_g"][None, :].astype(f32)
    beta = params["ln_b"][None, :].astype(f32)

    # cos/sin tiled to qheads*half lanes; the K build reads the first kvheads*half columns.
    cos = jnp.tile(freqs_cos[:seq].astype(f32), (1, qheads))   # (S, qH*half)
    sin = jnp.tile(freqs_sin[:seq].astype(f32), (1, qheads))

    kernel = functools.partial(
        _transformer_layer_kernel,
        qheads=qheads, kvheads=kvheads, head_size=head_size, tq=tq, eps=1e-5)

    operands = [x, cos, sin, g, beta, wq, bq, wk, bk, wv, bv, wo, bo,
                w1, b1, w2, b2, w3, b3]

    # TODO(synk): single-buffer grid-invariant weight blocks (pl.Buffered(1)) and tile the
    # MLP over hide_dim once production dims exceed the per-generation VMEM budget.
    def full_spec(a):
        return pl.BlockSpec(a.shape, lambda b, qt: (0,) * a.ndim)

    in_specs = [pl.BlockSpec((1, seq, dim), lambda b, qt: (b, 0, 0))]
    in_specs += [full_spec(a) for a in operands[1:]]
    out_spec = pl.BlockSpec((1, tq, dim), lambda b, qt: (b, qt, 0))

    # generation-aware VMEM budget (64 MiB/TC on v7x, 128 MiB on v5e/v6e)
    try:
        vmem_cap = int(pltpu.get_tpu_info().vmem_capacity_bytes)
    except Exception:
        vmem_cap = 64 * 1024 * 1024
    vmem_limit = int(min(0.85 * vmem_cap, 100 * 1024 * 1024))

    # rough cost hint for XLA scheduling around the fused layer
    flops = (2 * bs * seq * dim * head_size * (qheads + 2 * kvheads)   # q,k,v proj
             + 4 * bs * qheads * seq * seq * head_size                 # scores + PV
             + 2 * bs * seq * (qheads * head_size) * dim               # out proj
             + 4 * bs * seq * dim * hide_dim                           # w1, w2
             + 2 * bs * seq * hide_dim * dim)                          # w3
    transcendentals = bs * (qheads * seq * seq + seq * hide_dim + 4 * seq)
    bytes_accessed = (sum(int(a.size) * a.dtype.itemsize for a in operands)
                      + bs * seq * dim * 4)

    return pl.pallas_call(
        kernel,
        out_shape=jax.ShapeDtypeStruct((bs, seq, dim), x.dtype),
        grid_spec=pltpu.PrefetchScalarGridSpec(
            num_scalar_prefetch=0,
            grid=(bs, n_qt),
            in_specs=in_specs,
            out_specs=out_spec,
            scratch_shapes=[
                pltpu.VMEM((seq, dim), jnp.bfloat16),                  # LN(x), reused per tile
                pltpu.VMEM((kvheads, seq, head_size), jnp.bfloat16),   # rotated K, lane-packed
                pltpu.VMEM((kvheads, seq, head_size), jnp.bfloat16),   # V
                pltpu.VMEM((tq, qheads * head_size), jnp.bfloat16),    # per-head attn outputs
            ]),
        compiler_params=pltpu.CompilerParams(
            dimension_semantics=("parallel", "arbitrary"),
            vmem_limit_bytes=vmem_limit),
        cost_estimate=pl.CostEstimate(flops=int(flops),
                                      transcendentals=int(transcendentals),
                                      bytes_accessed=int(bytes_accessed)),
    )(*operands)


# ------------------ pure-JAX reference (mirrors the PyTorch module) ------------------
def reference_forward(x, freqs_cos, freqs_sin, params, *, qheads, kvheads):
    prec = jax.lax.Precision.HIGHEST
    bs, seq, dim = x.shape
    head_size = dim // qheads
    scale = qheads // kvheads

    def ln(v):
        mu = v.mean(-1, keepdims=True)
        var = ((v - mu) ** 2).mean(-1, keepdims=True)
        return (v - mu) / jnp.sqrt(var + 1e-5) * params["ln_g"] + params["ln_b"]

    def linear(v, w, b):
        return jnp.einsum("...i,oi->...o", v, w, precision=prec) + b

    def rope(t, cos, sin):  # t: (bs, seq, H, hs), interleaved (real, imag) pairs
        tr = t.reshape(*t.shape[:-1], -1, 2)
        re, im = tr[..., 0], tr[..., 1]
        c = cos[None, :, None, :]
        s = sin[None, :, None, :]
        out = jnp.stack([re * c - im * s, re * s + im * c], axis=-1)
        return out.reshape(t.shape)

    xn = ln(x)
    q = linear(xn, params["wq"], params["bq"]).reshape(bs, seq, qheads, head_size)
    k = linear(xn, params["wk"], params["bk"]).reshape(bs, seq, kvheads, head_size)
    v = linear(xn, params["wv"], params["bv"]).reshape(bs, seq, kvheads, head_size)
    cos, sin = freqs_cos[:seq], freqs_sin[:seq]
    q = rope(q, cos, sin).transpose(0, 2, 1, 3)
    k = rope(k, cos, sin).transpose(0, 2, 1, 3)
    v = v.transpose(0, 2, 1, 3)
    k = jnp.repeat(k, scale, axis=1)
    v = jnp.repeat(v, scale, axis=1)
    score = jnp.einsum("bhqd,bhkd->bhqk", q, k, precision=prec) / jnp.sqrt(
        jnp.float32(head_size))
    score = jax.nn.softmax(score, axis=-1)
    o = jnp.einsum("bhqk,bhkd->bhqd", score, v, precision=prec)
    o = o.transpose(0, 2, 1, 3).reshape(bs, seq, -1)
    att = linear(o, params["wo"], params["bo"]) + x
    hn = ln(att)
    m = linear(linear(hn, params["w1"], params["b1"])
               * jax.nn.silu(linear(hn, params["w2"], params["b2"])),
               params["w3"], params["b3"])
    return m + att


if __name__ == "__main__":
    bs, seq, dim, hide_dim = 2, 8, 32, 64
    qheads, kvheads = 4, 2
    head_size = dim // qheads
    max_seq = 16

    key = jax.random.PRNGKey(0)
    keys = jax.random.split(key, 18)
    std = 0.05
    f32 = jnp.float32
    params = {
        "ln_g": 1.0 + 0.1 * jax.random.normal(keys[0], (dim,), f32),
        "ln_b": 0.05 * jax.random.normal(keys[1], (dim,), f32),
        "wq": std * jax.random.normal(keys[2], (qheads * head_size, dim), f32),
        "bq": std * jax.random.normal(keys[3], (qheads * head_size,), f32),
        "wk": std * jax.random.normal(keys[4], (kvheads * head_size, dim), f32),
        "bk": std * jax.random.normal(keys[5], (kvheads * head_size,), f32),
        "wv": std * jax.random.normal(keys[6], (kvheads * head_size, dim), f32),
        "bv": std * jax.random.normal(keys[7], (kvheads * head_size,), f32),
        "wo": std * jax.random.normal(keys[8], (dim, qheads * head_size), f32),
        "bo": std * jax.random.normal(keys[9], (dim,), f32),
        "w1": std * jax.random.normal(keys[10], (hide_dim, dim), f32),
        "b1": std * jax.random.normal(keys[11], (hide_dim,), f32),
        "w2": std * jax.random.normal(keys[12], (hide_dim, dim), f32),
        "b2": std * jax.random.normal(keys[13], (hide_dim,), f32),
        "w3": std * jax.random.normal(keys[14], (dim, hide_dim), f32),
        "b3": std * jax.random.normal(keys[15], (dim,), f32),
    }
    x = jax.random.normal(keys[16], (bs, seq, dim), f32)

    # freqs_cis expressed as (cos, sin); equivalent to torch.polar(ones, t ⊗ inv_freq)
    theta = 10000.0
    inv_freq = 1.0 / (theta ** (jnp.arange(0, head_size, 2, dtype=f32) / head_size))
    angles = jnp.outer(jnp.arange(max_seq, dtype=f32), inv_freq)   # (max_seq, hs//2)
    freqs_cos, freqs_sin = jnp.cos(angles), jnp.sin(angles)

    out = transformer_layer_pallas(x, freqs_cos, freqs_sin, params,
                                   qheads=qheads, kvheads=kvheads)
    out = jax.block_until_ready(out)

    ref = reference_forward(x, freqs_cos, freqs_sin, params,
                            qheads=qheads, kvheads=kvheads)
    err = float(jnp.max(jnp.abs(out - ref)))
    assert err < 5e-3, f"kernel/reference mismatch, max abs err = {err}"
    print("KERNEL_OK")
</pallas_src>

<mosaic_0001>
module attributes {stable_mosaic.version = 11 : i64} {
  func.func @_transformer_layer_kernel(%arg0: i32, %arg1: i32, %arg2: memref<1x8x32xf32, #tpu.memory_space<vmem>>, %arg3: memref<8x16xf32, #tpu.memory_space<vmem>>, %arg4: memref<8x16xf32, #tpu.memory_space<vmem>>, %arg5: memref<1x32xf32, #tpu.memory_space<vmem>>, %arg6: memref<1x32xf32, #tpu.memory_space<vmem>>, %arg7: memref<32x32xbf16, #tpu.memory_space<vmem>>, %arg8: memref<1x32xf32, #tpu.memory_space<vmem>>, %arg9: memref<32x16xbf16, #tpu.memory_space<vmem>>, %arg10: memref<1x16xf32, #tpu.memory_space<vmem>>, %arg11: memref<32x16xbf16, #tpu.memory_space<vmem>>, %arg12: memref<1x16xf32, #tpu.memory_space<vmem>>, %arg13: memref<32x32xbf16, #tpu.memory_space<vmem>>, %arg14: memref<1x32xf32, #tpu.memory_space<vmem>>, %arg15: memref<32x64xbf16, #tpu.memory_space<vmem>>, %arg16: memref<1x64xf32, #tpu.memory_space<vmem>>, %arg17: memref<32x64xbf16, #tpu.memory_space<vmem>>, %arg18: memref<1x64xf32, #tpu.memory_space<vmem>>, %arg19: memref<64x32xbf16, #tpu.memory_space<vmem>>, %arg20: memref<1x32xf32, #tpu.memory_space<vmem>>, %arg21: memref<1x8x32xf32, #tpu.memory_space<vmem>>, %arg22: memref<8x32xbf16, #tpu.memory_space<vmem>>, %arg23: memref<2x8x8xbf16, #tpu.memory_space<vmem>>, %arg24: memref<2x8x8xbf16, #tpu.memory_space<vmem>>, %arg25: memref<8x32xbf16, #tpu.memory_space<vmem>>) attributes {dimension_semantics = [#tpu.dimension_semantics<parallel>, #tpu.dimension_semantics<arbitrary>], iteration_bounds = array<i64: 2, 1>, scalar_prefetch = 0 : i64, scratch_operands = 4 : i64, tpu.core_type = #tpu.core_type<tc>, window_params = [{transform_indices = @transform_0, window_bounds = array<i64: 1, 8, 32>}, {pipeline_mode = #tpu.pipeline_mode<synchronous>, transform_indices = @transform_1, window_bounds = array<i64: 8, 16>}, {pipeline_mode = #tpu.pipeline_mode<synchronous>, transform_indices = @transform_2, window_bounds = array<i64: 8, 16>}, {pipeline_mode = #tpu.pipeline_mode<synchronous>, transform_indices = @transform_3, window_bounds = array<i64: 1, 32>}, {pipeline_mode = #tpu.pipeline_mode<synchronous>, transform_indices = @transform_4, window_bounds = array<i64: 1, 32>}, {pipeline_mode = #tpu.pipeline_mode<synchronous>, transform_indices = @transform_5, window_bounds = array<i64: 32, 32>}, {pipeline_mode = #tpu.pipeline_mode<synchronous>, transform_indices = @transform_6, window_bounds = array<i64: 1, 32>}, {pipeline_mode = #tpu.pipeline_mode<synchronous>, transform_indices = @transform_7, window_bounds = array<i64: 32, 16>}, {pipeline_mode = #tpu.pipeline_mode<synchronous>, transform_indices = @transform_8, window_bounds = array<i64: 1, 16>}, {pipeline_mode = #tpu.pipeline_mode<synchronous>, transform_indices = @transform_9, window_bounds = array<i64: 32, 16>}, {pipeline_mode = #tpu.pipeline_mode<synchronous>, transform_indices = @transform_10, window_bounds = array<i64: 1, 16>}, {pipeline_mode = #tpu.pipeline_mode<synchronous>, transform_indices = @transform_11, window_bounds = array<i64: 32, 32>}, {pipeline_mode = #tpu.pipeline_mode<synchronous>, transform_indices = @transform_12, window_bounds = array<i64: 1, 32>}, {pipeline_mode = #tpu.pipeline_mode<synchronous>, transform_indices = @transform_13, window_bounds = array<i64: 32, 64>}, {pipeline_mode = #tpu.pipeline_mode<synchronous>, transform_indices = @transform_14, window_bounds = array<i64: 1, 64>}, {pipeline_mode = #tpu.pipeline_mode<synchronous>, transform_indices = @transform_15, window_bounds = array<i64: 32, 64>}, {pipeline_mode = #tpu.pipeline_mode<synchronous>, transform_indices = @transform_16, window_bounds = array<i64: 1, 64>}, {pipeline_mode = #tpu.pipeline_mode<synchronous>, transform_indices = @transform_17, window_bounds = array<i64: 64, 32>}, {pipeline_mode = #tpu.pipeline_mode<synchronous>, transform_indices = @transform_18, window_bounds = array<i64: 1, 32>}, {transform_indices = @transform_19, window_bounds = array<i64: 1, 8, 32>}]} {
    %c0 = arith.constant 0 : index
    %c0_0 = arith.constant 0 : index
    %0 = vector.load %arg5[%c0, %c0_0] : memref<1x32xf32, #tpu.memory_space<vmem>>, vector<1x32xf32>
    %1 = vector.shape_cast %0 : vector<1x32xf32> to vector<32xf32>
    %c0_1 = arith.constant 0 : index
    %c0_2 = arith.constant 0 : index
    %2 = vector.load %arg6[%c0_1, %c0_2] : memref<1x32xf32, #tpu.memory_space<vmem>>, vector<1x32xf32>
    %3 = vector.shape_cast %2 : vector<1x32xf32> to vector<32xf32>
    %c0_i32 = arith.constant 0 : i32
    %4 = arith.cmpi eq, %arg1, %c0_i32 : i32
    %5 = arith.extui %4 : i1 to i32
    %c0_i32_3 = arith.constant 0 : i32
    %6 = arith.cmpi ne, %5, %c0_i32_3 : i32
    scf.if %6 {
      %c0_70 = arith.constant 0 : index
      %c0_71 = arith.constant 0 : index
      %c0_72 = arith.constant 0 : index
      %164 = vector.load %arg2[%c0_70, %c0_71, %c0_72] : memref<1x8x32xf32, #tpu.memory_space<vmem>>, vector<1x8x32xf32>
      %165 = vector.shape_cast %164 : vector<1x8x32xf32> to vector<8x32xf32>
      %cst_73 = arith.constant dense<0.000000e+00> : vector<8xf32>
      %166 = vector.multi_reduction <add>, %165, %cst_73 [1] : vector<8x32xf32> to vector<8xf32>
      %167 = vector.shape_cast %166 : vector<8xf32> to vector<8x1xf32>
      %cst_74 = arith.constant 3.200000e+01 : f32
      %168 = vector.broadcast %cst_74 : f32 to vector<8x1xf32>
      %169 = arith.divf %167, %168 : vector<8x1xf32>
      %170 = vector.broadcast %169 : vector<8x1xf32> to vector<8x32xf32>
      %171 = arith.subf %165, %170 : vector<8x32xf32>
      %172 = arith.mulf %171, %171 : vector<8x32xf32>
      %cst_75 = arith.constant dense<0.000000e+00> : vector<8xf32>
      %173 = vector.multi_reduction <add>, %172, %cst_75 [1] : vector<8x32xf32> to vector<8xf32>
      %174 = vector.shape_cast %173 : vector<8xf32> to vector<8x1xf32>
      %cst_76 = arith.constant 3.200000e+01 : f32
      %175 = vector.broadcast %cst_76 : f32 to vector<8x1xf32>
      %176 = arith.divf %174, %175 : vector<8x1xf32>
      %cst_77 = arith.constant 9.99999974E-6 : f32
      %177 = vector.broadcast %cst_77 : f32 to vector<8x1xf32>
      %178 = arith.addf %176, %177 : vector<8x1xf32>
      %179 = math.rsqrt %178 : vector<8x1xf32>
      %180 = vector.broadcast %179 : vector<8x1xf32> to vector<8x32xf32>
      %181 = arith.mulf %171, %180 : vector<8x32xf32>
      %182 = vector.shape_cast %1 : vector<32xf32> to vector<1x32xf32>
      %183 = vector.broadcast %182 : vector<1x32xf32> to vector<8x32xf32>
      %184 = arith.mulf %181, %183 : vector<8x32xf32>
      %185 = vector.shape_cast %3 : vector<32xf32> to vector<1x32xf32>
      %186 = vector.broadcast %185 : vector<1x32xf32> to vector<8x32xf32>
      %187 = arith.addf %184, %186 : vector<8x32xf32>
      %188 = arith.truncf %187 : vector<8x32xf32> to vector<8x32xbf16>
      %c0_78 = arith.constant 0 : index
      %c0_79 = arith.constant 0 : index
      %189 = vector.load %arg22[%c0_78, %c0_79] : memref<8x32xbf16, #tpu.memory_space<vmem>>, vector<8x32xbf16>
      tpu.vector_store %arg22[%c0_78, %c0_79], %188 {strides = array<i32>} : memref<8x32xbf16, #tpu.memory_space<vmem>>, vector<8x32xbf16>,
      %c0_80 = arith.constant 0 : index
      %c0_81 = arith.constant 0 : index
      %190 = vector.load %arg9[%c0_80, %c0_81] : memref<32x16xbf16, #tpu.memory_space<vmem>>, vector<32x16xbf16>
      %cst_82 = arith.constant dense<0.000000e+00> : vector<8x16xf32>
      %191 = tpu.matmul %188, %190, %cst_82 {dimension_numbers = #tpu.dot_dimension_numbers<[1], [0], [0], [1], [0, 0, 1, 1], [], []>} : vector<8x32xbf16>, vector<32x16xbf16>, vector<8x16xf32> -> vector<8x16xf32>
      %c0_83 = arith.constant 0 : index
      %c0_84 = arith.constant 0 : index
      %192 = vector.load %arg10[%c0_83, %c0_84] : memref<1x16xf32, #tpu.memory_space<vmem>>, vector<1x16xf32>
      %193 = vector.shape_cast %192 : vector<1x16xf32> to vector<16xf32>
      %194 = vector.shape_cast %193 : vector<16xf32> to vector<1x16xf32>
      %195 = vector.broadcast %194 : vector<1x16xf32> to vector<8x16xf32>
      %196 = arith.addf %191, %195 : vector<8x16xf32>
      %c0_85 = arith.constant 0 : index
      %c0_86 = arith.constant 0 : index
      %197 = vector.load %arg11[%c0_85, %c0_86] : memref<32x16xbf16, #tpu.memory_space<vmem>>, vector<32x16xbf16>
      %cst_87 = arith.constant dense<0.000000e+00> : vector<8x16xf32>
      %198 = tpu.matmul %188, %197, %cst_87 {dimension_numbers = #tpu.dot_dimension_numbers<[1], [0], [0], [1], [0, 0, 1, 1], [], []>} : vector<8x32xbf16>, vector<32x16xbf16>, vector<8x16xf32> -> vector<8x16xf32>
      %c0_88 = arith.constant 0 : index
      %c0_89 = arith.constant 0 : index
      %199 = vector.load %arg12[%c0_88, %c0_89] : memref<1x16xf32, #tpu.memory_space<vmem>>, vector<1x16xf32>
      %200 = vector.shape_cast %199 : vector<1x16xf32> to vector<16xf32>
      %201 = vector.shape_cast %200 : vector<16xf32> to vector<1x16xf32>
      %202 = vector.broadcast %201 : vector<1x16xf32> to vector<8x16xf32>
      %203 = arith.addf %198, %202 : vector<8x16xf32>
      %c0_90 = arith.constant 0 : index
      %c0_91 = arith.constant 0 : index
      %204 = vector.load %arg3[%c0_90, %c0_91] : memref<8x16xf32, #tpu.memory_space<vmem>>, vector<8x8xf32>
      %c0_92 = arith.constant 0 : index
      %c0_93 = arith.constant 0 : index
      %205 = vector.load %arg4[%c0_92, %c0_93] : memref<8x16xf32, #tpu.memory_space<vmem>>, vector<8x8xf32>
      %206 = vector.extract_strided_slice %196 {offsets = [0, 0], sizes = [8, 8], strides = [1, 1]} : vector<8x16xf32> to vector<8x8xf32>
      %207 = vector.extract_strided_slice %196 {offsets = [0, 8], sizes = [8, 8], strides = [1, 1]} : vector<8x16xf32> to vector<8x8xf32>
      %208 = arith.mulf %206, %204 : vector<8x8xf32>
      %209 = arith.mulf %207, %205 : vector<8x8xf32>
      %210 = arith.subf %208, %209 : vector<8x8xf32>
      %211 = arith.mulf %206, %205 : vector<8x8xf32>
      %212 = arith.mulf %207, %204 : vector<8x8xf32>
      %213 = arith.addf %211, %212 : vector<8x8xf32>
      %214 = vector.extract_strided_slice %210 {offsets = [0, 0], sizes = [8, 4], strides = [1, 1]} : vector<8x8xf32> to vector<8x4xf32>
      %215 = vector.extract_strided_slice %213 {offsets = [0, 0], sizes = [8, 4], strides = [1, 1]} : vector<8x8xf32> to vector<8x4xf32>
      %216 = tpu.concatenate %214, %215 in 1 : vector<8x4xf32>, vector<8x4xf32> -> vector<8x8xf32>
      %217 = arith.truncf %216 : vector<8x8xf32> to vector<8x8xbf16>
      %c0_94 = arith.constant 0 : index
      %c0_95 = arith.constant 0 : index
      %c0_96 = arith.constant 0 : index
      %218 = vector.load %arg23[%c0_94, %c0_95, %c0_96] : memref<2x8x8xbf16, #tpu.memory_space<vmem>>, vector<1x8x8xbf16>
      %219 = vector.shape_cast %218 : vector<1x8x8xbf16> to vector<8x8xbf16>
      %220 = vector.shape_cast %217 : vector<8x8xbf16> to vector<1x8x8xbf16>
      tpu.vector_store %arg23[%c0_94, %c0_95, %c0_96], %220 {strides = array<i32>} : memref<2x8x8xbf16, #tpu.memory_space<vmem>>, vector<1x8x8xbf16>,
      %221 = vector.extract_strided_slice %203 {offsets = [0, 0], sizes = [8, 8], strides = [1, 1]} : vector<8x16xf32> to vector<8x8xf32>
      %222 = arith.truncf %221 : vector<8x8xf32> to vector<8x8xbf16>
      %c0_97 = arith.constant 0 : index
      %c0_98 = arith.constant 0 : index
      %c0_99 = arith.constant 0 : index
      %223 = vector.load %arg24[%c0_97, %c0_98, %c0_99] : memref<2x8x8xbf16, #tpu.memory_space<vmem>>, vector<1x8x8xbf16>
      %224 = vector.shape_cast %223 : vector<1x8x8xbf16> to vector<8x8xbf16>
      %225 = vector.shape_cast %222 : vector<8x8xbf16> to vector<1x8x8xbf16>
      tpu.vector_store %arg24[%c0_97, %c0_98, %c0_99], %225 {strides = array<i32>} : memref<2x8x8xbf16, #tpu.memory_space<vmem>>, vector<1x8x8xbf16>,
      %226 = vector.extract_strided_slice %210 {offsets = [0, 4], sizes = [8, 4], strides = [1, 1]} : vector<8x8xf32> to vector<8x4xf32>
      %227 = vector.extract_strided_slice %213 {offsets = [0, 4], sizes = [8, 4], strides = [1, 1]} : vector<8x8xf32> to vector<8x4xf32>
      %228 = tpu.concatenate %226, %227 in 1 : vector<8x4xf32>, vector<8x4xf32> -> vector<8x8xf32>
      %229 = arith.truncf %228 : vector<8x8xf32> to vector<8x8xbf16>
      %c1_100 = arith.constant 1 : index
      %c0_101 = arith.constant 0 : index
      %c0_102 = arith.constant 0 : index
      %230 = vector.load %arg23[%c1_100, %c0_101, %c0_102] : memref<2x8x8xbf16, #tpu.memory_space<vmem>>, vector<1x8x8xbf16>
      %231 = vector.shape_cast %230 : vector<1x8x8xbf16> to vector<8x8xbf16>
      %232 = vector.shape_cast %229 : vector<8x8xbf16> to vector<1x8x8xbf16>
      tpu.vector_store %arg23[%c1_100, %c0_101, %c0_102], %232 {strides = array<i32>} : memref<2x8x8xbf16, #tpu.memory_space<vmem>>, vector<1x8x8xbf16>,
      %233 = vector.extract_strided_slice %203 {offsets = [0, 8], sizes = [8, 8], strides = [1, 1]} : vector<8x16xf32> to vector<8x8xf32>
      %234 = arith.truncf %233 : vector<8x8xf32> to vector<8x8xbf16>
      %c1_103 = arith.constant 1 : index
      %c0_104 = arith.constant 0 : index
      %c0_105 = arith.constant 0 : index
      %235 = vector.load %arg24[%c1_103, %c0_104, %c0_105] : memref<2x8x8xbf16, #tpu.memory_space<vmem>>, vector<1x8x8xbf16>
      %236 = vector.shape_cast %235 : vector<1x8x8xbf16> to vector<8x8xbf16>
      %237 = vector.shape_cast %234 : vector<8x8xbf16> to vector<1x8x8xbf16>
      tpu.vector_store %arg24[%c1_103, %c0_104, %c0_105], %237 {strides = array<i32>} : memref<2x8x8xbf16, #tpu.memory_space<vmem>>, vector<1x8x8xbf16>,
    } else {
    }
    %c8_i32 = arith.constant 8 : i32
    %7 = arith.muli %arg1, %c8_i32 : i32
    %8 = tpu.assume_multiple %7, 8 : i32
    %c0_4 = arith.constant 0 : index
    %9 = arith.index_cast %8 : i32 to index
    %c0_5 = arith.constant 0 : index
    %10 = vector.load %arg2[%c0_4, %9, %c0_5] : memref<1x8x32xf32, #tpu.memory_space<vmem>>, vector<1x8x32xf32>
    %11 = vector.shape_cast %10 : vector<1x8x32xf32> to vector<8x32xf32>
    %12 = arith.index_cast %8 : i32 to index
    %c0_6 = arith.constant 0 : index
    %13 = vector.load %arg22[%12, %c0_6] : memref<8x32xbf16, #tpu.memory_space<vmem>>, vector<8x32xbf16>
    %14 = arith.index_cast %8 : i32 to index
    %c0_7 = arith.constant 0 : index
    %15 = vector.load %arg3[%14, %c0_7] : memref<8x16xf32, #tpu.memory_space<vmem>>, vector<8x16xf32>
    %16 = arith.index_cast %8 : i32 to index
    %c0_8 = arith.constant 0 : index
    %17 = vector.load %arg4[%16, %c0_8] : memref<8x16xf32, #tpu.memory_space<vmem>>, vector<8x16xf32>
    %c0_9 = arith.constant 0 : index
    %c0_10 = arith.constant 0 : index
    %18 = vector.load %arg7[%c0_9, %c0_10] : memref<32x32xbf16, #tpu.memory_space<vmem>>, vector<32x32xbf16>
    %cst = arith.constant dense<0.000000e+00> : vector<8x32xf32>
    %19 = tpu.matmul %13, %18, %cst {dimension_numbers = #tpu.dot_dimension_numbers<[1], [0], [0], [1], [0, 0, 1, 1], [], []>} : vector<8x32xbf16>, vector<32x32xbf16>, vector<8x32xf32> -> vector<8x32xf32>
    %c0_11 = arith.constant 0 : index
    %c0_12 = arith.constant 0 : index
    %20 = vector.load %arg8[%c0_11, %c0_12] : memref<1x32xf32, #tpu.memory_space<vmem>>, vector<1x32xf32>
    %21 = vector.shape_cast %20 : vector<1x32xf32> to vector<32xf32>
    %22 = vector.shape_cast %21 : vector<32xf32> to vector<1x32xf32>
    %23 = vector.broadcast %22 : vector<1x32xf32> to vector<8x32xf32>
    %24 = arith.addf %19, %23 : vector<8x32xf32>
    %25 = vector.extract_strided_slice %24 {offsets = [0, 0], sizes = [8, 16], strides = [1, 1]} : vector<8x32xf32> to vector<8x16xf32>
    %26 = vector.extract_strided_slice %24 {offsets = [0, 16], sizes = [8, 16], strides = [1, 1]} : vector<8x32xf32> to vector<8x16xf32>
    %27 = arith.mulf %25, %15 : vector<8x16xf32>
    %28 = arith.mulf %26, %17 : vector<8x16xf32>
    %29 = arith.subf %27, %28 : vector<8x16xf32>
    %30 = arith.truncf %29 : vector<8x16xf32> to vector<8x16xbf16>
    %31 = arith.mulf %25, %17 : vector<8x16xf32>
    %32 = arith.mulf %26, %15 : vector<8x16xf32>
    %33 = arith.addf %31, %32 : vector<8x16xf32>
    %34 = arith.truncf %33 : vector<8x16xf32> to vector<8x16xbf16>
    %35 = vector.extract_strided_slice %30 {offsets = [0, 0], sizes = [8, 4], strides = [1, 1]} : vector<8x16xbf16> to vector<8x4xbf16>
    %36 = vector.extract_strided_slice %34 {offsets = [0, 0], sizes = [8, 4], strides = [1, 1]} : vector<8x16xbf16> to vector<8x4xbf16>
    %37 = tpu.concatenate %35, %36 in 1 : vector<8x4xbf16>, vector<8x4xbf16> -> vector<8x8xbf16>
    %38 = vector.extract_strided_slice %30 {offsets = [0, 4], sizes = [8, 4], strides = [1, 1]} : vector<8x16xbf16> to vector<8x4xbf16>
    %39 = vector.extract_strided_slice %34 {offsets = [0, 4], sizes = [8, 4], strides = [1, 1]} : vector<8x16xbf16> to vector<8x4xbf16>
    %40 = tpu.concatenate %38, %39 in 1 : vector<8x4xbf16>, vector<8x4xbf16> -> vector<8x8xbf16>
    %41 = tpu.concatenate %37, %40 in 0 : vector<8x8xbf16>, vector<8x8xbf16> -> vector<16x8xbf16>
    %c0_13 = arith.constant 0 : index
    %c0_14 = arith.constant 0 : index
    %c0_15 = arith.constant 0 : index
    %42 = vector.load %arg23[%c0_13, %c0_14, %c0_15] : memref<2x8x8xbf16, #tpu.memory_space<vmem>>, vector<1x8x8xbf16>
    %43 = vector.shape_cast %42 : vector<1x8x8xbf16> to vector<8x8xbf16>
    %cst_16 = arith.constant dense<0.000000e+00> : vector<16x8xf32>
    %44 = tpu.matmul %41, %43, %cst_16 {dimension_numbers = #tpu.dot_dimension_numbers<[1], [1], [0], [0], [0, 0, 1, 0], [], []>} : vector<16x8xbf16>, vector<8x8xbf16>, vector<16x8xf32> -> vector<16x8xf32>
    %cst_17 = arith.constant 0.353553385 : f32
    %45 = vector.broadcast %cst_17 : f32 to vector<16x8xf32>
    %46 = arith.mulf %44, %45 : vector<16x8xf32>
    %cst_18 = arith.constant dense<0xFF800000> : vector<16xf32>
    %47 = vector.multi_reduction <maximumf>, %46, %cst_18 [1] : vector<16x8xf32> to vector<16xf32>
    %48 = vector.shape_cast %47 : vector<16xf32> to vector<16x1xf32>
    %49 = vector.broadcast %48 : vector<16x1xf32> to vector<16x8xf32>
    %50 = arith.subf %46, %49 : vector<16x8xf32>
    %51 = math.exp %50 : vector<16x8xf32>
    %cst_19 = arith.constant dense<0.000000e+00> : vector<16xf32>
    %52 = vector.multi_reduction <add>, %51, %cst_19 [1] : vector<16x8xf32> to vector<16xf32>
    %53 = vector.shape_cast %52 : vector<16xf32> to vector<16x1xf32>
    %54 = arith.truncf %51 : vector<16x8xf32> to vector<16x8xbf16>
    %c0_20 = arith.constant 0 : index
    %c0_21 = arith.constant 0 : index
    %c0_22 = arith.constant 0 : index
    %55 = vector.load %arg24[%c0_20, %c0_21, %c0_22] : memref<2x8x8xbf16, #tpu.memory_space<vmem>>, vector<1x8x8xbf16>
    %56 = vector.shape_cast %55 : vector<1x8x8xbf16> to vector<8x8xbf16>
    %cst_23 = arith.constant dense<0.000000e+00> : vector<16x8xf32>
    %57 = tpu.matmul %54, %56, %cst_23 {dimension_numbers = #tpu.dot_dimension_numbers<[1], [0], [0], [1], [0, 0, 1, 1], [], []>} : vector<16x8xbf16>, vector<8x8xbf16>, vector<16x8xf32> -> vector<16x8xf32>
    %58 = tpu.reciprocal %53 {approx = true} : vector<16x1xf32> -> vector<16x1xf32>
    %59 = vector.broadcast %58 : vector<16x1xf32> to vector<16x8xf32>
    %60 = arith.mulf %57, %59 : vector<16x8xf32>
    %61 = vector.extract_strided_slice %60 {offsets = [0, 0], sizes = [8, 8], strides = [1, 1]} : vector<16x8xf32> to vector<8x8xf32>
    %62 = arith.truncf %61 : vector<8x8xf32> to vector<8x8xbf16>
    %c0_24 = arith.constant 0 : index
    %c0_25 = arith.constant 0 : index
    %63 = vector.load %arg25[%c0_24, %c0_25] : memref<8x32xbf16, #tpu.memory_space<vmem>>, vector<8x8xbf16>
    tpu.vector_store %arg25[%c0_24, %c0_25], %62 {strides = array<i32>} : memref<8x32xbf16, #tpu.memory_space<vmem>>, vector<8x8xbf16>,
    %64 = vector.extract_strided_slice %60 {offsets = [8, 0], sizes = [8, 8], strides = [1, 1]} : vector<16x8xf32> to vector<8x8xf32>
    %65 = arith.truncf %64 : vector<8x8xf32> to vector<8x8xbf16>
    %c0_26 = arith.constant 0 : index
    %c8 = arith.constant 8 : index
    %66 = vector.load %arg25[%c0_26, %c8] : memref<8x32xbf16, #tpu.memory_space<vmem>>, vector<8x8xbf16>
    tpu.vector_store %arg25[%c0_26, %c8], %65 {strides = array<i32>} : memref<8x32xbf16, #tpu.memory_space<vmem>>, vector<8x8xbf16>,
    %67 = vector.extract_strided_slice %30 {offsets = [0, 8], sizes = [8, 4], strides = [1, 1]} : vector<8x16xbf16> to vector<8x4xbf16>
    %68 = vector.extract_strided_slice %34 {offsets = [0, 8], sizes = [8, 4], strides = [1, 1]} : vector<8x16xbf16> to vector<8x4xbf16>
    %69 = tpu.concatenate %67, %68 in 1 : vector<8x4xbf16>, vector<8x4xbf16> -> vector<8x8xbf16>
    %70 = vector.extract_strided_slice %30 {offsets = [0, 12], sizes = [8, 4], strides = [1, 1]} : vector<8x16xbf16> to vector<8x4xbf16>
    %71 = vector.extract_strided_slice %34 {offsets = [0, 12], sizes = [8, 4], strides = [1, 1]} : vector<8x16xbf16> to vector<8x4xbf16>
    %72 = tpu.concatenate %70, %71 in 1 : vector<8x4xbf16>, vector<8x4xbf16> -> vector<8x8xbf16>
    %73 = tpu.concatenate %69, %72 in 0 : vector<8x8xbf16>, vector<8x8xbf16> -> vector<16x8xbf16>
    %c1 = arith.constant 1 : index
    %c0_27 = arith.constant 0 : index
    %c0_28 = arith.constant 0 : index
    %74 = vector.load %arg23[%c1, %c0_27, %c0_28] : memref<2x8x8xbf16, #tpu.memory_space<vmem>>, vector<1x8x8xbf16>
    %75 = vector.shape_cast %74 : vector<1x8x8xbf16> to vector<8x8xbf16>
    %cst_29 = arith.constant dense<0.000000e+00> : vector<16x8xf32>
    %76 = tpu.matmul %73, %75, %cst_29 {dimension_numbers = #tpu.dot_dimension_numbers<[1], [1], [0], [0], [0, 0, 1, 0], [], []>} : vector<16x8xbf16>, vector<8x8xbf16>, vector<16x8xf32> -> vector<16x8xf32>
    %cst_30 = arith.constant 0.353553385 : f32
    %77 = vector.broadcast %cst_30 : f32 to vector<16x8xf32>
    %78 = arith.mulf %76, %77 : vector<16x8xf32>
    %cst_31 = arith.constant dense<0xFF800000> : vector<16xf32>
    %79 = vector.multi_reduction <maximumf>, %78, %cst_31 [1] : vector<16x8xf32> to vector<16xf32>
    %80 = vector.shape_cast %79 : vector<16xf32> to vector<16x1xf32>
    %81 = vector.broadcast %80 : vector<16x1xf32> to vector<16x8xf32>
    %82 = arith.subf %78, %81 : vector<16x8xf32>
    %83 = math.exp %82 : vector<16x8xf32>
    %cst_32 = arith.constant dense<0.000000e+00> : vector<16xf32>
    %84 = vector.multi_reduction <add>, %83, %cst_32 [1] : vector<16x8xf32> to vector<16xf32>
    %85 = vector.shape_cast %84 : vector<16xf32> to vector<16x1xf32>
    %86 = arith.truncf %83 : vector<16x8xf32> to vector<16x8xbf16>
    %c1_33 = arith.constant 1 : index
    %c0_34 = arith.constant 0 : index
    %c0_35 = arith.constant 0 : index
    %87 = vector.load %arg24[%c1_33, %c0_34, %c0_35] : memref<2x8x8xbf16, #tpu.memory_space<vmem>>, vector<1x8x8xbf16>
    %88 = vector.shape_cast %87 : vector<1x8x8xbf16> to vector<8x8xbf16>
    %cst_36 = arith.constant dense<0.000000e+00> : vector<16x8xf32>
    %89 = tpu.matmul %86, %88, %cst_36 {dimension_numbers = #tpu.dot_dimension_numbers<[1], [0], [0], [1], [0, 0, 1, 1], [], []>} : vector<16x8xbf16>, vector<8x8xbf16>, vector<16x8xf32> -> vector<16x8xf32>
    %90 = tpu.reciprocal %85 {approx = true} : vector<16x1xf32> -> vector<16x1xf32>
    %91 = vector.broadcast %90 : vector<16x1xf32> to vector<16x8xf32>
    %92 = arith.mulf %89, %91 : vector<16x8xf32>
    %93 = vector.extract_strided_slice %92 {offsets = [0, 0], sizes = [8, 8], strides = [1, 1]} : vector<16x8xf32> to vector<8x8xf32>
    %94 = arith.truncf %93 : vector<8x8xf32> to vector<8x8xbf16>
    %c0_37 = arith.constant 0 : index
    %c16 = arith.constant 16 : index
    %95 = vector.load %arg25[%c0_37, %c16] : memref<8x32xbf16, #tpu.memory_space<vmem>>, vector<8x8xbf16>
    tpu.vector_store %arg25[%c0_37, %c16], %94 {strides = array<i32>} : memref<8x32xbf16, #tpu.memory_space<vmem>>, vector<8x8xbf16>,
    %96 = vector.extract_strided_slice %92 {offsets = [8, 0], sizes = [8, 8], strides = [1, 1]} : vector<16x8xf32> to vector<8x8xf32>
    %97 = arith.truncf %96 : vector<8x8xf32> to vector<8x8xbf16>
    %c0_38 = arith.constant 0 : index
    %c24 = arith.constant 24 : index
    %98 = vector.load %arg25[%c0_38, %c24] : memref<8x32xbf16, #tpu.memory_space<vmem>>, vector<8x8xbf16>
    tpu.vector_store %arg25[%c0_38, %c24], %97 {strides = array<i32>} : memref<8x32xbf16, #tpu.memory_space<vmem>>, vector<8x8xbf16>,
    %c0_39 = arith.constant 0 : index
    %c0_40 = arith.constant 0 : index
    %99 = vector.load %arg25[%c0_39, %c0_40] : memref<8x32xbf16, #tpu.memory_space<vmem>>, vector<8x32xbf16>
    %c0_41 = arith.constant 0 : index
    %c0_42 = arith.constant 0 : index
    %100 = vector.load %arg13[%c0_41, %c0_42] : memref<32x32xbf16, #tpu.memory_space<vmem>>, vector<32x32xbf16>
    %cst_43 = arith.constant dense<0.000000e+00> : vector<8x32xf32>
    %101 = tpu.matmul %99, %100, %cst_43 {dimension_numbers = #tpu.dot_dimension_numbers<[1], [0], [0], [1], [0, 0, 1, 1], [], []>} : vector<8x32xbf16>, vector<32x32xbf16>, vector<8x32xf32> -> vector<8x32xf32>
    %c0_44 = arith.constant 0 : index
    %c0_45 = arith.constant 0 : index
    %102 = vector.load %arg14[%c0_44, %c0_45] : memref<1x32xf32, #tpu.memory_space<vmem>>, vector<1x32xf32>
    %103 = vector.shape_cast %102 : vector<1x32xf32> to vector<32xf32>
    %104 = vector.shape_cast %103 : vector<32xf32> to vector<1x32xf32>
    %105 = vector.broadcast %104 : vector<1x32xf32> to vector<8x32xf32>
    %106 = arith.addf %101, %105 : vector<8x32xf32>
    %107 = arith.addf %106, %11 : vector<8x32xf32>
    %cst_46 = arith.constant dense<0.000000e+00> : vector<8xf32>
    %108 = vector.multi_reduction <add>, %107, %cst_46 [1] : vector<8x32xf32> to vector<8xf32>
    %109 = vector.shape_cast %108 : vector<8xf32> to vector<8x1xf32>
    %cst_47 = arith.constant 3.200000e+01 : f32
    %110 = vector.broadcast %cst_47 : f32 to vector<8x1xf32>
    %111 = arith.divf %109, %110 : vector<8x1xf32>
    %112 = vector.broadcast %111 : vector<8x1xf32> to vector<8x32xf32>
    %113 = arith.subf %107, %112 : vector<8x32xf32>
    %114 = arith.mulf %113, %113 : vector<8x32xf32>
    %cst_48 = arith.constant dense<0.000000e+00> : vector<8xf32>
    %115 = vector.multi_reduction <add>, %114, %cst_48 [1] : vector<8x32xf32> to vector<8xf32>
    %116 = vector.shape_cast %115 : vector<8xf32> to vector<8x1xf32>
    %cst_49 = arith.constant 3.200000e+01 : f32
    %117 = vector.broadcast %cst_49 : f32 to vector<8x1xf32>
    %118 = arith.divf %116, %117 : vector<8x1xf32>
    %cst_50 = arith.constant 9.99999974E-6 : f32
    %119 = vector.broadcast %cst_50 : f32 to vector<8x1xf32>
    %120 = arith.addf %118, %119 : vector<8x1xf32>
    %121 = math.rsqrt %120 : vector<8x1xf32>
    %122 = vector.broadcast %121 : vector<8x1xf32> to vector<8x32xf32>
    %123 = arith.mulf %113, %122 : vector<8x32xf32>
    %124 = vector.shape_cast %1 : vector<32xf32> to vector<1x32xf32>
    %125 = vector.broadcast %124 : vector<1x32xf32> to vector<8x32xf32>
    %126 = arith.mulf %123, %125 : vector<8x32xf32>
    %127 = vector.shape_cast %3 : vector<32xf32> to vector<1x32xf32>
    %128 = vector.broadcast %127 : vector<1x32xf32> to vector<8x32xf32>
    %129 = arith.addf %126, %128 : vector<8x32xf32>
    %130 = arith.truncf %129 : vector<8x32xf32> to vector<8x32xbf16>
    %c0_51 = arith.constant 0 : index
    %c0_52 = arith.constant 0 : index
    %131 = vector.load %arg15[%c0_51, %c0_52] : memref<32x64xbf16, #tpu.memory_space<vmem>>, vector<32x64xbf16>
    %cst_53 = arith.constant dense<0.000000e+00> : vector<8x64xf32>
    %132 = tpu.matmul %130, %131, %cst_53 {dimension_numbers = #tpu.dot_dimension_numbers<[1], [0], [0], [1], [0, 0, 1, 1], [], []>} : vector<8x32xbf16>, vector<32x64xbf16>, vector<8x64xf32> -> vector<8x64xf32>
    %c0_54 = arith.constant 0 : index
    %c0_55 = arith.constant 0 : index
    %133 = vector.load %arg16[%c0_54, %c0_55] : memref<1x64xf32, #tpu.memory_space<vmem>>, vector<1x64xf32>
    %134 = vector.shape_cast %133 : vector<1x64xf32> to vector<64xf32>
    %135 = vector.shape_cast %134 : vector<64xf32> to vector<1x64xf32>
    %136 = vector.broadcast %135 : vector<1x64xf32> to vector<8x64xf32>
    %137 = arith.addf %132, %136 : vector<8x64xf32>
    %c0_56 = arith.constant 0 : index
    %c0_57 = arith.constant 0 : index
    %138 = vector.load %arg17[%c0_56, %c0_57] : memref<32x64xbf16, #tpu.memory_space<vmem>>, vector<32x64xbf16>
    %cst_58 = arith.constant dense<0.000000e+00> : vector<8x64xf32>
    %139 = tpu.matmul %130, %138, %cst_58 {dimension_numbers = #tpu.dot_dimension_numbers<[1], [0], [0], [1], [0, 0, 1, 1], [], []>} : vector<8x32xbf16>, vector<32x64xbf16>, vector<8x64xf32> -> vector<8x64xf32>
    %c0_59 = arith.constant 0 : index
    %c0_60 = arith.constant 0 : index
    %140 = vector.load %arg18[%c0_59, %c0_60] : memref<1x64xf32, #tpu.memory_space<vmem>>, vector<1x64xf32>
    %141 = vector.shape_cast %140 : vector<1x64xf32> to vector<64xf32>
    %142 = vector.shape_cast %141 : vector<64xf32> to vector<1x64xf32>
    %143 = vector.broadcast %142 : vector<1x64xf32> to vector<8x64xf32>
    %144 = arith.addf %139, %143 : vector<8x64xf32>
    %145 = arith.negf %144 : vector<8x64xf32>
    %146 = math.exp %145 : vector<8x64xf32>
    %cst_61 = arith.constant 1.000000e+00 : f32
    %147 = vector.broadcast %cst_61 : f32 to vector<8x64xf32>
    %148 = arith.addf %147, %146 : vector<8x64xf32>
    %149 = arith.divf %147, %148 : vector<8x64xf32>
    %150 = arith.mulf %144, %149 : vector<8x64xf32>
    %151 = arith.mulf %137, %150 : vector<8x64xf32>
    %152 = arith.truncf %151 : vector<8x64xf32> to vector<8x64xbf16>
    %c0_62 = arith.constant 0 : index
    %c0_63 = arith.constant 0 : index
    %153 = vector.load %arg19[%c0_62, %c0_63] : memref<64x32xbf16, #tpu.memory_space<vmem>>, vector<64x32xbf16>
    %cst_64 = arith.constant dense<0.000000e+00> : vector<8x32xf32>
    %154 = tpu.matmul %152, %153, %cst_64 {dimension_numbers = #tpu.dot_dimension_numbers<[1], [0], [0], [1], [0, 0, 1, 1], [], []>} : vector<8x64xbf16>, vector<64x32xbf16>, vector<8x32xf32> -> vector<8x32xf32>
    %c0_65 = arith.constant 0 : index
    %c0_66 = arith.constant 0 : index
    %155 = vector.load %arg20[%c0_65, %c0_66] : memref<1x32xf32, #tpu.memory_space<vmem>>, vector<1x32xf32>
    %156 = vector.shape_cast %155 : vector<1x32xf32> to vector<32xf32>
    %157 = vector.shape_cast %156 : vector<32xf32> to vector<1x32xf32>
    %158 = vector.broadcast %157 : vector<1x32xf32> to vector<8x32xf32>
    %159 = arith.addf %154, %158 : vector<8x32xf32>
    %160 = arith.addf %159, %107 : vector<8x32xf32>
    %c0_67 = arith.constant 0 : index
    %c0_68 = arith.constant 0 : index
    %c0_69 = arith.constant 0 : index
    %161 = vector.load %arg21[%c0_67, %c0_68, %c0_69] : memref<1x8x32xf32, #tpu.memory_space<vmem>>, vector<1x8x32xf32>
    %162 = vector.shape_cast %161 : vector<1x8x32xf32> to vector<8x32xf32>
    %163 = vector.shape_cast %160 : vector<8x32xf32> to vector<1x8x32xf32>
    tpu.vector_store %arg21[%c0_67, %c0_68, %c0_69], %163 {strides = array<i32>} : memref<1x8x32xf32, #tpu.memory_space<vmem>>, vector<1x8x32xf32>,
    return
  }
  func.func @transform_0(%arg0: i32, %arg1: i32) -> (i32, i32, i32) {
    %c0_i32 = arith.constant 0 : i32
    %c0_i32_0 = arith.constant 0 : i32
    %c0_i32_1 = arith.constant 0 : i32
    return %arg0, %c0_i32, %c0_i32_0 : i32, i32, i32
  }
  func.func @transform_1(%arg0: i32, %arg1: i32) -> (i32, i32) {
    %c0_i32 = arith.constant 0 : i32
    %c0_i32_0 = arith.constant 0 : i32
    %c0_i32_1 = arith.constant 0 : i32
    return %c0_i32, %c0_i32_0 : i32, i32
  }
  func.func @transform_2(%arg0: i32, %arg1: i32) -> (i32, i32) {
    %c0_i32 = arith.constant 0 : i32
    %c0_i32_0 = arith.constant 0 : i32
    %c0_i32_1 = arith.constant 0 : i32
    return %c0_i32, %c0_i32_0 : i32, i32
  }
  func.func @transform_3(%arg0: i32, %arg1: i32) -> (i32, i32) {
    %c0_i32 = arith.constant 0 : i32
    %c0_i32_0 = arith.constant 0 : i32
    %c0_i32_1 = arith.constant 0 : i32
    return %c0_i32, %c0_i32_0 : i32, i32
  }
  func.func @transform_4(%arg0: i32, %arg1: i32) -> (i32, i32) {
    %c0_i32 = arith.constant 0 : i32
    %c0_i32_0 = arith.constant 0 : i32
    %c0_i32_1 = arith.constant 0 : i32
    return %c0_i32, %c0_i32_0 : i32, i32
  }
  func.func @transform_5(%arg0: i32, %arg1: i32) -> (i32, i32) {
    %c0_i32 = arith.constant 0 : i32
    %c0_i32_0 = arith.constant 0 : i32
    %c0_i32_1 = arith.constant 0 : i32
    return %c0_i32, %c0_i32_0 : i32, i32
  }
  func.func @transform_6(%arg0: i32, %arg1: i32) -> (i32, i32) {
    %c0_i32 = arith.constant 0 : i32
    %c0_i32_0 = arith.constant 0 : i32
    %c0_i32_1 = arith.constant 0 : i32
    return %c0_i32, %c0_i32_0 : i32, i32
  }
  func.func @transform_7(%arg0: i32, %arg1: i32) -> (i32, i32) {
    %c0_i32 = arith.constant 0 : i32
    %c0_i32_0 = arith.constant 0 : i32
    %c0_i32_1 = arith.constant 0 : i32
    return %c0_i32, %c0_i32_0 : i32, i32
  }
  func.func @transform_8(%arg0: i32, %arg1: i32) -> (i32, i32) {
    %c0_i32 = arith.constant 0 : i32
    %c0_i32_0 = arith.constant 0 : i32
    %c0_i32_1 = arith.constant 0 : i32
    return %c0_i32, %c0_i32_0 : i32, i32
  }
  func.func @transform_9(%arg0: i32, %arg1: i32) -> (i32, i32) {
    %c0_i32 = arith.constant 0 : i32
    %c0_i32_0 = arith.constant 0 : i32
    %c0_i32_1 = arith.constant 0 : i32
    return %c0_i32, %c0_i32_0 : i32, i32
  }
  func.func @transform_10(%arg0: i32, %arg1: i32) -> (i32, i32) {
    %c0_i32 = arith.constant 0 : i32
    %c0_i32_0 = arith.constant 0 : i32
    %c0_i32_1 = arith.constant 0 : i32
    return %c0_i32, %c0_i32_0 : i32, i32
  }
  func.func @transform_11(%arg0: i32, %arg1: i32) -> (i32, i32) {
    %c0_i32 = arith.constant 0 : i32
    %c0_i32_0 = arith.constant 0 : i32
    %c0_i32_1 = arith.constant 0 : i32
    return %c0_i32, %c0_i32_0 : i32, i32
  }
  func.func @transform_12(%arg0: i32, %arg1: i32) -> (i32, i32) {
    %c0_i32 = arith.constant 0 : i32
    %c0_i32_0 = arith.constant 0 : i32
    %c0_i32_1 = arith.constant 0 : i32
    return %c0_i32, %c0_i32_0 : i32, i32
  }
  func.func @transform_13(%arg0: i32, %arg1: i32) -> (i32, i32) {
    %c0_i32 = arith.constant 0 : i32
    %c0_i32_0 = arith.constant 0 : i32
    %c0_i32_1 = arith.constant 0 : i32
    return %c0_i32, %c0_i32_0 : i32, i32
  }
  func.func @transform_14(%arg0: i32, %arg1: i32) -> (i32, i32) {
    %c0_i32 = arith.constant 0 : i32
    %c0_i32_0 = arith.constant 0 : i32
    %c0_i32_1 = arith.constant 0 : i32
    return %c0_i32, %c0_i32_0 : i32, i32
  }
  func.func @transform_15(%arg0: i32, %arg1: i32) -> (i32, i32) {
    %c0_i32 = arith.constant 0 : i32
    %c0_i32_0 = arith.constant 0 : i32
    %c0_i32_1 = arith.constant 0 : i32
    return %c0_i32, %c0_i32_0 : i32, i32
  }
  func.func @transform_16(%arg0: i32, %arg1: i32) -> (i32, i32) {
    %c0_i32 = arith.constant 0 : i32
    %c0_i32_0 = arith.constant 0 : i32
    %c0_i32_1 = arith.constant 0 : i32
    return %c0_i32, %c0_i32_0 : i32, i32
  }
  func.func @transform_17(%arg0: i32, %arg1: i32) -> (i32, i32) {
    %c0_i32 = arith.constant 0 : i32
    %c0_i32_0 = arith.constant 0 : i32
    %c0_i32_1 = arith.constant 0 : i32
    return %c0_i32, %c0_i32_0 : i32, i32
  }
  func.func @transform_18(%arg0: i32, %arg1: i32) -> (i32, i32) {
    %c0_i32 = arith.constant 0 : i32
    %c0_i32_0 = arith.constant 0 : i32
    %c0_i32_1 = arith.constant 0 : i32
    return %c0_i32, %c0_i32_0 : i32, i32
  }
  func.func @transform_19(%arg0: i32, %arg1: i32) -> (i32, i32, i32) {
    %c0_i32 = arith.constant 0 : i32
    %c0_i32_0 = arith.constant 0 : i32
    return %arg0, %arg1, %c0_i32 : i32, i32, i32
  }
}

</mosaic_0001>

<bundles_post_ra>
// kernel: tpu_custom_call.1
= control target key start
LH: loop header
LB: loop body
LE: loop exit
PB: predicated region body
PF: predicated region fallthrough
CT: control target
= control target key end

     0   :  { %s2890_s0 = inlined_call_operand.vmem [shape: f32[2,8,32], index: 0, kind: input, shape index: {}]   ;;  %s2891_s1 = inlined_call_operand.hbm [shape: f32[8,16], index: 1, kind: input, shape index: {}]   ;;  %s2892_s2 = inlined_call_operand.hbm [shape: f32[8,16], index: 2, kind: input, shape index: {}]   ;;  %s2893_s3 = inlined_call_operand.hbm [shape: f32[1,32], index: 3, kind: input, shape index: {}]   ;;  %s2894_s4 = inlined_call_operand.hbm [shape: f32[1,32], index: 4, kind: input, shape index: {}]   ;;  %s2895_s5 = inlined_call_operand.vmem [shape: bf16[32,32], index: 5, kind: input, shape index: {}]   ;;  %s2896_s6 = inlined_call_operand.hbm [shape: f32[1,32], index: 6, kind: input, shape index: {}]   ;;  %s2897_s7 = inlined_call_operand.vmem [shape: bf16[32,16], index: 7, kind: input, shape index: {}]   ;;  %s2898_s8 = inlined_call_operand.hbm [shape: f32[1,16], index: 8, kind: input, shape index: {}]   ;;  %s2899_s9 = inlined_call_operand.vmem [shape: bf16[32,16], index: 9, kind: input, shape index: {}]   ;;  %s2900_s10 = inlined_call_operand.vmem [shape: f32[1,16], index: 10, kind: input, shape index: {}]   ;;  %s2901_s11 = inlined_call_operand.vmem [shape: bf16[32,32], index: 11, kind: input, shape index: {}]   ;;  %s2902_s12 = inlined_call_operand.vmem [shape: f32[1,32], index: 12, kind: input, shape index: {}]   ;;  %s2903_s13 = inlined_call_operand.vmem [shape: bf16[32,64], index: 13, kind: input, shape index: {}]   ;;  %s2904_s14 = inlined_call_operand.vmem [shape: f32[1,64], index: 14, kind: input, shape index: {}]   ;;  %s2905_s15 = inlined_call_operand.vmem [shape: bf16[32,64], index: 15, kind: input, shape index: {}]   ;;  %s2906_s16 = inlined_call_operand.vmem [shape: f32[1,64], index: 16, kind: input, shape index: {}]   ;;  %s2907_s17 = inlined_call_operand.vmem [shape: bf16[64,32], index: 17, kind: input, shape index: {}]   ;;  %s2908_s18 = inlined_call_operand.vmem [shape: f32[1,32], index: 18, kind: input, shape index: {}]   ;;  %s2909_s19 = inlined_call_operand.hbm [shape: f32[2,8,32], index: 19, kind: output, shape index: {}]  }
   0x1   :  { %2924 = sst [smem:[#allocation31_spill]] %s2890_s0 }
   0x2   :  { %2925 = sst [smem:[#allocation32_spill]] %s2891_s1 }
   0x3   :  { %2926 = sst [smem:[#allocation33_spill]] %s2892_s2 }
   0x4   :  { %2927 = sst [smem:[#allocation34_spill]] %s2893_s3 }
   0x5   :  { %2928 = sst [smem:[#allocation35_spill]] %s2894_s4 }
   0x6   :  { %2929 = sst [smem:[#allocation36_spill]] %s2909_s19 }
   0x7   :  { %24 = vsyncpa [#allocation7], 0 }
   0x8   :  { %25 = vsyncpa [#allocation10], 0 }
   0x9   :  { %26 = vsyncpa [#allocation13], 0 }
   0xa   :  { %27 = vsyncpa [#allocation16], 0 }
   0xb   :  { %28 = vsyncpa [#allocation8], 0 }
   0xc   :  { %30 = vsyncpa [#allocation8 + $0x1], 0  ;;  %s2507_s0 = smov 0   ;;  %s2509_s30 = smov 0  }
   0xd   :  { %s2511_s20 = smov 0   ;;  %s2513_s21 = smov 0  }
   0xe   :  { %s2515_s1 = smov 0   ;;  %s2517_s22 = smov 0  }
   0xf LB: > { %2930 = sst [smem:[#allocation23_spill]] %s2368_s0  ;;  %s1791_s2 = sadd.s32 4294967295, %s2388_s22   ;;  %s2388_s22 = sphi %s2517_s22, %s36_s22   ;;  %s2384_s1 = sphi %s2515_s1, %s2961_s1   ;;  %s2380_s21 = sphi %s2513_s21, %s2960_s21   ;;  %s2376_s20 = sphi %s2511_s20, %s2959_s20   ;;  %s2372_s30 = sphi %s2509_s30, %s2963_s30   ;;  %s2368_s0 = sphi %s2507_s0, %s2962_s0  }
  0x10   : > { %2931 = sst [smem:[#allocation24_spill]] %s2376_s20  ;;  %s1792_s23 = sadd.s32 4294967294, %s2388_s22  }
  0x11   : > { %2932 = sst [smem:[#allocation25_spill]] %s2384_s1  ;;  %s48_s24 = sadd.s32 1, %s2384_s1 }
  0x12   : > { %2933 = sst [smem:[#allocation26_spill]] %s2388_s22  ;;  %s461_s25 = sadd.s32 1, %s2376_s20 }
  0x13   : > { %p50_p0 = scmp.ge.s32.totalorder %s48_s24, 2  ;;  %p471_p1 = scmp.ne.s32.totalorder %s2376_s20, %s2372_s30 }
  0x14   : > { %p472_p2 = scmp.eq.s32.totalorder %s1791_s2, 1  ;;  %p477_p3 = scmp.ne.s32.totalorder %s2372_s30, %s2368_s0 }
  0x15   : > { %s2965_s24 = smov (%p50_p0, %s48_s24), 0  ;;  %p478_p5 = scmp.eq.s32.totalorder %s1792_s23, 1 }
  0x16   : > { %2934 = sst [smem:[#allocation27_spill]] %s2965_s24  ;;  %p2547_p4 = por %p472_p2, %p471_p1 }
  0x17   : > { %s456_s26 = ssub.s32 %s2384_s1, %s2965_s24  ;;  %p1793_p6 = scmp.ge.s32.totalorder %s2388_s22, 1 }
  0x18   : > { %s2935_s3 = scalar_select %p2547_p4, 1, 0 }
  0x19   : > { %p459_p7 = scmp.eq.s32.totalorder %s456_s26, 0  ;;  %p2554_p8 = por %p478_p5, %p477_p3 }
  0x1a   : > { %2936 = sst [smem:[#allocation28_spill]] %s2935_s3  ;;  %p485_p9 = scmp.lt.s32.totalorder %s2388_s22, 3 }
  0x1b   : > { %s2937_s27 = scalar_select %p2554_p8, 1, 0 }
  0x1c   : > { %s2560_s28 = scalar_select %p459_p7, %s2376_s20, %s461_s25  }
  0x1d   : > { %2938 = sst [smem:[#allocation29_spill]] %s2937_s27  ;;  %p2562_p10 = pnand %p1793_p6, %p485_p9 }
  0x1e   : > { %2939 = sst [smem:[#allocation30_spill]] %s2560_s28  ;;  %p2566_p11 = scmp.eq.s32.totalorder %s1791_s2, 0 }
  0x1f   : > { %s2940_s29 = scalar_select %p2562_p10, 1, 0 }
  0x20   : > { %s2941_s0 = scalar_select %p2566_p11, 1, 0 }
  0x21   : > { %p2000_p12 = pneg %p2562_p10  ;;  %s2390_s23 = smov [#allocation9]  }
  0x22   : > { %s509_s26 = sshll.u32 %s2390_s23, 4  ;;  %s2391_s24 = smov [#allocation12]   ;;  %s510_s26 = int_to_ptr.vmem [resolvable:$true] %s509_s26 }
  0x23   : > { %s531_s1 = sshll.u32 %s2391_s24, 4  ;;  %p2574_p13 = pnand %p2566_p11, %p2000_p12  ;;  %s532_s1 = int_to_ptr.vmem [resolvable:$true] %s531_s1 }
  0x24   : > { %s2151_s28 = scalar_lea.vmem %s510_s26, 128  ;;  %p2159_p5 = scmp.lt.s32.totalorder %s510_s26, %s510_s26 }
  0x25   : > { %p2580_p0 = pneg %p2574_p13  ;;  %p2152_p1 = scmp.ne.s32.totalorder %s510_s26, %s2151_s28 }
  0x26   : > { %p2160_p6 = scmp.lt.s32.totalorder %s2151_s28, %s2151_s28 }
  0x27   : > { %p2154_p2 = pnand %p2152_p1, %p2580_p0 }
  0x28   : > { %p2161_p7 = por %p2160_p6, %p2159_p5 }
  0x29   : > { %p2155_p3 = pneg %p2154_p2 }
  0x2b   : > { %p2162_p9 = pnand %p2161_p7, %p2155_p3 }
  0x2d   : > { %2165 = shalt.err (!%p2162_p9)
}
  0x2e   : > { %s2944_s20 = sld [smem:[#allocation33_spill]]  ;;  %s2177_s27 = scalar_lea.vmem %s532_s1, 16 }
  0x2f   : > { %p2178_p12 = scmp.ne.s32.totalorder %s532_s1, %s2177_s27  ;;  %s2184_s22 = scalar_lea.vmem %s532_s1, 32 }
  0x30   : > { %p2185_p1 = scmp.lt.s32.totalorder %s532_s1, %s532_s1  ;;  %p2186_p2 = scmp.lt.s32.totalorder %s2184_s22, %s2177_s27 }
  0x31   : > { %p2180_p8 = pnand %p2178_p12, %p2580_p0 }
  0x32   : > { %p2187_p11 = por %p2186_p2, %p2185_p1 }
  0x33   : > { %p2181_p4 = pneg %p2180_p8 }
  0x34   : > { %2006 = dma.hbm_to_vmem [thread:$0]  (!%p2574_p13), %s2944_s20, 128, %s510_s26, [#allocation10]  }
  0x35   : > { %p2188_p10 = pnand %p2187_p11, %p2181_p4 }
  0x37   : > { %2191 = shalt.err (!%p2188_p10)
}
  0x38   : > { %s2945_s4 = sld [smem:[#allocation35_spill]]  ;;  %s2392_s24 = smov [#allocation6]  }
  0x39   : > { %s498_s20 = sshll.u32 %s2392_s24, 4  ;;  %s2393_s26 = smov [#allocation11]   ;;  %s499_s20 = int_to_ptr.vmem [resolvable:$true] %s498_s20 }
  0x3a   : > { %s520_s23 = sshll.u32 %s2393_s26, 4  ;;  %s2203_s3 = scalar_lea.vmem %s499_s20, 128  ;;  %s521_s23 = int_to_ptr.vmem [resolvable:$true] %s520_s23 }
  0x3b   : > { %p2204_p8 = scmp.ne.s32.totalorder %s499_s20, %s2203_s3  ;;  %p2211_p6 = scmp.lt.s32.totalorder %s499_s20, %s499_s20 }
  0x3c   : > { %p2212_p4 = scmp.lt.s32.totalorder %s2203_s3, %s2203_s3 }
  0x3d   : > { %p2206_p3 = pnand %p2204_p8, %p2580_p0 }
  0x3e   : > { %2012 = dma.hbm_to_vmem [thread:$0]  (!%p2574_p13), %s2945_s4, 16, %s532_s1, [#allocation13]  }
  0x3f   : > { %p2207_p5 = pneg %p2206_p3  ;;  %p2213_p10 = por %p2212_p4, %p2211_p6 }
  0x41   : > { %p2214_p11 = pnand %p2213_p10, %p2207_p5 }
  0x43   : > { %2217 = shalt.err (!%p2214_p11)
}
  0x44   : > { %s2946_s1 = sld [smem:[#allocation32_spill]]  ;;  %s2229_s27 = scalar_lea.vmem %s521_s23, 16 }
  0x45   : > { %p2230_p7 = scmp.ne.s32.totalorder %s521_s23, %s2229_s27  ;;  %s2236_s28 = scalar_lea.vmem %s521_s23, 32 }
  0x46   : > { %p2237_p1 = scmp.lt.s32.totalorder %s521_s23, %s521_s23  ;;  %p2238_p2 = scmp.lt.s32.totalorder %s2236_s28, %s2229_s27 }
  0x47   : > { %p2232_p9 = pnand %p2230_p7, %p2580_p0 }
  0x48   : > { %p2239_p8 = por %p2238_p2, %p2237_p1 }
  0x49   : > { %p2233_p12 = pneg %p2232_p9 }
  0x4a   : > { %2003 = dma.hbm_to_vmem [thread:$0]  (!%p2574_p13), %s2946_s1, 128, %s499_s20, [#allocation7]  }
  0x4b   : > { %p2240_p3 = pnand %p2239_p8, %p2233_p12 }
  0x4d   : > { %2243 = shalt.err (!%p2240_p3)
}
  0x4e   : > { %s2947_s26 = sld [smem:[#allocation34_spill]]  ;;  %s2394_s20 = smov [#allocation14]  }
  0x4f   : > { %s545_s19 = sshll.u32 %s2394_s20, 4  ;;  %s2395_s22 = smov [#allocation15]   ;;  %s546_s19 = int_to_ptr.vmem [resolvable:$true] %s545_s19 }
  0x50   : > { %s559_s1 = sshll.u32 %s2395_s22, 4  ;;  %s2255_s4 = scalar_lea.vmem %s546_s19, 16  ;;  %s560_s1 = int_to_ptr.vmem [resolvable:$true] %s559_s1 }
  0x51   : > { %p2256_p5 = scmp.ne.s32.totalorder %s546_s19, %s2255_s4  ;;  %s2262_s27 = scalar_lea.vmem %s546_s19, 32 }
  0x52   : > { %p2263_p10 = scmp.lt.s32.totalorder %s546_s19, %s546_s19  ;;  %p2264_p11 = scmp.lt.s32.totalorder %s2262_s27, %s2255_s4 }
  0x53   : > { %p2258_p6 = pnand %p2256_p5, %p2580_p0 }
  0x54   : > { %2009 = dma.hbm_to_vmem [thread:$0]  (!%p2574_p13), %s2947_s26, 16, %s521_s23, [#allocation10]  }
  0x55   : > { %p2259_p4 = pneg %p2258_p6  ;;  %p2265_p7 = por %p2264_p11, %p2263_p10 }
  0x57   : > { %p2266_p9 = pnand %p2265_p7, %p2259_p4 }
  0x59   : > { %2269 = shalt.err (!%p2266_p9)
}
  0x5a   : > { %2015 = dma.hbm_to_vmem [thread:$0]  (!%p2574_p13), %s2896_s6, 16, %s546_s19, [#allocation13]  }
  0x5b   : > { %s2281_s3 = scalar_lea.vmem %s560_s1, 16  ;;  %s2288_s24 = scalar_lea.vmem %s560_s1, 32 }
  0x5c   : > { %p2282_p12 = scmp.ne.s32.totalorder %s560_s1, %s2281_s3  ;;  %p2289_p8 = scmp.lt.s32.totalorder %s560_s1, %s560_s1 }
  0x5d   : > { %p2290_p3 = scmp.lt.s32.totalorder %s2288_s24, %s2281_s3 }
  0x5e   : > { %p2284_p1 = pnand %p2282_p12, %p2580_p0 }
  0x5f   : > { %p2291_p5 = por %p2290_p3, %p2289_p8 }
  0x60   : > { %p2285_p2 = pneg %p2284_p1 }
  0x62   : > { %p2292_p6 = pnand %p2291_p5, %p2285_p2 }
  0x64   : > { %2295 = shalt.err (!%p2292_p6)
}
  0x65   : > { %2018 = dma.hbm_to_vmem [thread:$0]  (!%p2574_p13), %s2898_s8, 16, %s560_s1, [#allocation16]  }
  0x66   : > { %p2948_p4 = scmp.ne.s32.totalorder %s2940_s29, 0 }
  0x67   : > { %p2949_p10 = scmp.ne.s32.totalorder (!%p2948_p4), %s2941_s0, 0 }
  0x68   : > { %609 = sbr.rel (%p2948_p4) target bundleno = 2523 (0x9db), region = 96 }
  0x6d   : > { %2347 = dma.done.wait (%p2949_p10), [#allocation7], 128  }
  0x6e   : > { %2349 = vsyncadd (%p2949_p10), [#allocation7], 4294967168 }
  0x6f   : > { %2351 = dma.done.wait (%p2949_p10), [#allocation10], 144  }
  0x70   : > { %2353 = vsyncadd (%p2949_p10), [#allocation10], 4294967152 }
  0x71   : > { %2355 = dma.done.wait (%p2949_p10), [#allocation13], 32  }
  0x72   : > { %2357 = vsyncadd (%p2949_p10), [#allocation13], 4294967264 }
  0x73   : > { %2359 = dma.done.wait (%p2949_p10), [#allocation16], 16  }
  0x74   : > { %2361 = vsyncadd (%p2949_p10), [#allocation16], 4294967280  ;;  %p684_p13 = scmp.lt.s32.totalorder %s2380_s21, 1  ;;  %s2950_s19 = sld [smem:[#allocation31_spill]]  ;;  %vm696_vm0 = vcmask 261120   ;;  %v2100_v7 = vld [vmem:[%s2897_s7 + $0x8] sm:$0xff]  }
  0x75   : > { %v2396_v8 = vmov 0.0   ;;  %vm2397_vm1 = vmmov 0   ;;  %v2101_v9 = vld [vmem:[%s2897_s7] sm:$0xff]   ;;  %v2103_v10 = vld [vmem:[%s2895_s5 + $0x8] sm:$0xff]   ;;  %v2677_v12 = vld [vmem:[#allocation6] sm:$0xff]  ;;  %s2398_s26 = smov 8  }
  0x76   : > { %s685_s29 = scalar_select %p684_p13, %s2380_s21, 1  ;;  %1890 = vmatprep.subr.bf16.mxu1 %v2396_v8  ;;  %1894 = vmatprep.mubr.msk.bf16.mxu1 %vm2397_vm1, %v2396_v8  ;;  %v2105_v11 = vld [vmem:[%s2895_s5] sm:$0xff]   ;;  %v2689_v18 = vld [vmem:[#allocation11] ss:$0 sm:$0xff]  ;;  %v2691_v20 = vld [vmem:[#allocation12] ss:$0 sm:$0xff] }
  0x77   : > { %1891 = vmatpush3.bf16.msra.mxu1 %v2100_v7  ;;  %1906 = vmatprep.subr.bf16.mxu0 %v2396_v8  ;;  %v2679_v13 = vld [vmem:[#allocation9] sm:$0xff]  ;;  %vm726_vm2 = vcmask 257024   ;;  %v2102_v23 = vld [vmem:[%s2899_s9 + $0x8] sm:$0xff]   ;;  %vm888_vm3 = vcmask 60416   ;;  %s2401_s27 = smov 112   ;;  %vm1026_vm4 = vcmask 1043456  }
  0x78   : > { %s1809_s25 = sshll.u32 %s685_s29, 3  ;;  %1892 = vmatprep.subr.bf16.mxu1 %v2396_v8  ;;  %1910 = vmatprep.mubr.msk.bf16.mxu0 %vm2397_vm1, %v2396_v8  ;;  %s2399_s29 = smov 16   ;;  %v2104_v25 = vld [vmem:[%s2899_s9] sm:$0xff]   ;;  %v1810_v28 = vld [vmem:[#allocation15] ss:$0 sm:$0xff]  ;;  %vm885_vm5 = vcmask 31744  }
  0x79   : > { %1907 = vmatpush3.bf16.msra.mxu0 %v2103_v10  ;;  %872 = vrot.lane.b32.xlu1 %v2677_v12, %s2398_s26  ;;  %v1814_v36 = vld [vmem:[%s2900_s10] ss:$0 sm:$0xff]  ;;  %v1819_v37 = vld [vmem:[#allocation14] ss:$0 sm:$0xff]  ;;  %s2402_s28 = smov 4   ;;  %s2403_s23 = smov 124  }
  0x7a   : > { %s687_s22 = scalar_lea.vmem %s2950_s19, %s1809_s25  ;;  %1908 = vmatprep.subr.bf16.mxu0 %v2396_v8  ;;  %s2404_s3 = smov 116   ;;  %vm1030_vm6 = vcmask 64512   ;;  %vm1160_vm7 = vcmask 126016   ;;  %vm1309_vm8 = vcmask 191616   ;;  %vm1318_vm9 = vcmask 257216  }
  0x7b   : > { %v2649_v0 = vld [vmem:[%s687_s22] sm:$0xff]  ;;  %1893 = vmatpush3.bf16.msra.mxu1 %v2101_v9  ;;  %s2400_s22 = smov 120   ;;  %s2405_s20 = smov 24   ;;  %vm1594_vm10 = vcmask 523264  }
  0x7c   : > { %v697_v1 = vsel %vm696_vm0, %v2649_v0, 0.0  ;;  %1898 = vmatprep.subr.bf16.mxu1 %v2396_v8  ;;  %s2951_s4 = sld [smem:[#allocation28_spill]]  ;;  %s1850_s25 = sshll.u32 %s2380_s21, 7 }
  0x7d   : > { %698 = vadd.xlane.f32.xlu0 %v697_v1  ;;  %1909 = vmatpush3.bf16.msra.mxu0 %v2105_v11  ;;  %s2952_s19 = sld [smem:[#allocation36_spill]]  ;;  %s2406_s1 = smov [#allocation17]  }
  0x7e   : > { %1920 = vmatprep.subr.bf16.mxu0 %v2396_v8  ;;  %861 = vrot.lane.b32.xlu1 %v2679_v13, %s2398_s26 }
  0x82   : > { %1001 = vrot.lane.b32.xlu1 %v2677_v12, %s2399_s29  ;;  %p2953_p11 = scmp.ne.s32.totalorder %s2951_s4, 0 }
  0xeb   : > { %v873_v27 = vpop.permute.xlu1 %872 }
  0xf0   : > { %v862_v33 = vpop.permute.xlu1 %861 }
  0xf4   : > { %v1002_v47 = vpop.permute.xlu1 %1001 }
 0x106   : > { %v699_v2 = vpop.xlane.xlu0 %698 }
 0x107   : > { %v701_v3 = vmul.f32 0.03125, %v699_v2 }
 0x109   : > { %v702_v4 = vsub.f32 %v2649_v0, %v701_v3 }
 0x10b   : > { %v703_v5 = vmul.f32 %v702_v4, %v702_v4 }
 0x10d   : > { %v704_v6 = vsel %vm696_vm0, %v703_v5, 0.0 }
 0x10e   : > { %705 = vadd.xlane.f32.xlu0 %v704_v6 }
 0x124   : > { %989 = vrot.lane.b32.xlu0 %v2679_v13, %s2399_s29 }
 0x197   : > { %v706_v14 = vpop.xlane.xlu0 %705 }
 0x198   : > { %v707_v15 = vmul.f32 0.03125, %v706_v14 }
 0x19a   : > { %v708_v16 = vadd.f32 1e-05, %v707_v15 }
 0x19b   : > { %v990_v39 = vpop.permute.xlu0 %989 }
 0x19c   : > { %2116 = vrsqrt.f32 %v708_v16 }
 0x1a9   : > { %v2117_v17 = vpop.eup %2116 }
 0x1aa   : > { %v710_v19 = vmul.f32 %v2117_v17, %v702_v4 }
 0x1ac   : > { %v717_v21 = vmul.f32 %v2689_v18, %v710_v19 }
 0x1ae   : > { %v724_v22 = vadd.f32 %v2691_v20, %v717_v21 }
 0x1b0   : > { %v725_v24 = vpack.c.bf16 %v724_v22, %v724_v22 }
 0x1b2   : > { %727 = vst.msk [vmem:[#allocation2] sm:$0xf] %vm726_vm2, %v725_v24  ;;  %1895 = vmatmul.mubr.msk.bf16.vlgmr.msra.gmra.mxu1 %vm696_vm0, %v725_v24 }
 0x1b3   : > { %1899 = vmatpush3.bf16.msra.mxu1 %v2102_v23  ;;  %1902 = vmatprep.mubr.msk.bf16.mxu1 %vm2397_vm1, %v2396_v8 }
 0x1b4   : > { %1900 = vmatprep.subr.bf16.mxu1 %v2396_v8 }
 0x1b7   : > { %1901 = vmatpush3.bf16.msra.mxu1 %v2104_v25 }
 0x1b8   : > { %1914 = vmatprep.subr.bf16.mxu1 %v2396_v8 }
 0x1b9   : > { %v915_v26 = vld [vmem:[#allocation2] sm:$0xf] }
 0x1ba   : > { %1903 = vmatmul.mubr.msk.bf16.vlgmr.msra.gmra.mxu1 %vm696_vm0, %v725_v24  ;;  %1911 = vmatmul.mubr.msk.bf16.vlgmr.msra.gmra.mxu0 %vm696_vm0, %v915_v26 }
 0x1bb   : > { %1916 = vmatprep.mubr.msk.bf16.mxu1 %vm2397_vm1, %v2396_v8  ;;  %1922 = vmatprep.mubr.msk.bf16.mxu0 %vm2397_vm1, %v2396_v8 }
 0x272   : > { %v788_v29 = vpop.f32.mrf.mxu1 }
 0x273   : > { %v789_v30 = vadd.f32 %v1810_v28, %v788_v29 }
 0x274   : > { %v1896_v31 = vpop.f32.mrf.mxu1 }
 0x275   : > { %v875_v32 = vmul.f32 %v873_v27, %v789_v30  ;;  %v864_v38 = vmul.f32 %v862_v33, %v789_v30  ;;  %v870_v56 = vmul.f32 %v2679_v13, %v789_v30  ;;  %v859_v59 = vmul.f32 %v2677_v12, %v789_v30 }
 0x276   : > { %v791_v34 = vpop.f32.mrf.mxu1 }
 0x277   : > { %877 = vrot.lane.b32.xlu1 %v875_v32, %s2400_s22 }
 0x278   : > { %v1897_v35 = vpop.f32.mrf.mxu1 }
 0x27a   : > { %v851_v40 = vpop.f32.mrf.mxu1  ;;  %v981_v41 = vpop.f32.mrf.mxu0 }
 0x27b   : > { %v852_v42 = vadd.f32 %v1814_v36, %v851_v40  ;;  %v982_v43 = vadd.f32 %v1819_v37, %v981_v41  ;;  %866 = vrot.lane.b32.xlu1 %v864_v38, %s2400_s22 }
 0x27c   : > { %v1904_v44 = vpop.f32.mrf.mxu1  ;;  %v1912_v45 = vpop.f32.mrf.mxu0 }
 0x27d   : > { %v2717_v46 = vpack.c.bf16 %v852_v42, %v852_v42  ;;  %v992_v48 = vmul.f32 %v990_v39, %v982_v43  ;;  %v1004_v53 = vmul.f32 %v1002_v47, %v982_v43  ;;  %v987_v62 = vmul.f32 %v982_v43, %v2677_v12 }
 0x27e   : > { %v854_v49 = vpop.f32.mrf.mxu1  ;;  %v984_v50 = vpop.f32.mrf.mxu0  ;;  %v999_v3 = vmul.f32 %v982_v43, %v2679_v13 }
 0x27f   : > { %891 = vst.msk [vmem:[#allocation4] sm:$0xf] %vm888_vm3, %v2717_v46  ;;  %994 = vrot.lane.b32.xlu1 %v992_v48, %s2401_s27 }
 0x280   : > { %v1905_v51 = vpop.f32.mrf.mxu1  ;;  %v1913_v52 = vpop.f32.mrf.mxu0 }
 0x283   : > { %1006 = vrot.lane.b32.xlu1 %v1004_v53, %s2401_s27  ;;  %s2300_s27 = sshll.u32 %s2406_s1, 4  ;;  %s2301_s27 = int_to_ptr.vmem [resolvable:$false] %s2300_s27 }
 0x286   : > { %v1098_v54 = vld [vmem:[#allocation4] sm:$0xf] }
 0x287   : > { %v1103_v55 = vsel %vm1026_vm4, %v1098_v54, 0 }
 0x288   : > { %1921 = vmatpush3.bf16.msra.mxu0 %v1103_v55 }
 0x289   : > { %1932 = vmatprep.subr.bf16.mxu0 %v2396_v8 }
 0x2e9   : > { %v878_v57 = vpop.permute.xlu1 %877 }
 0x2ea   : > { %v880_v58 = vadd.f32 %v878_v57, %v870_v56 }
 0x2ec   : > { %882 = vrot.lane.b32.xlu1 %v880_v58, %s2402_s28 }
 0x2ed   : > { %v867_v60 = vpop.permute.xlu1 %866 }
 0x2ee   : > { %v869_v61 = vsub.f32 %v859_v59, %v867_v60 }
 0x2f0   : > { %893 = vrot.lane.b32.xlu0 %v869_v61, %s2403_s23 }
 0x2f1   : > { %v995_v63 = vpop.permute.xlu1 %994 }
 0x2f2   : > { %v997_v1 = vsub.f32 %v987_v62, %v995_v63 }
 0x2f4   : > { %v998_v2 = vpack.c.bf16 %v997_v1, %v997_v1 }
 0x2f5   : > { %v1007_v4 = vpop.permute.xlu1 %1006 }
 0x2f6   : > { %v1009_v5 = vadd.f32 %v1007_v4, %v999_v3  ;;  %1019 = vrot.lane.b32.xlu1 %v998_v2, %s2403_s23 }
 0x2f8   : > { %v1010_v6 = vpack.c.bf16 %v1009_v5, %v1009_v5 }
 0x2fa   : > { %1012 = vrot.lane.b32.xlu0 %v1010_v6, %s2402_s28  ;;  %1169 = vrot.lane.b32.xlu1 %v998_v2, %s2404_s3  ;;  %s681_s28 = sand.u32 1, %s2372_s30  }
 0x2fb   : > { %s1641_s21 = scalar_lea.sflag [#allocation8], %s681_s28 }
 0x2fe   : > { %1171 = vrot.lane.b32.xlu0 %v1010_v6, %s2400_s22  ;;  %1162 = vrot.lane.b32.xlu1 %v998_v2, %s2400_s22 }
 0x302   : > { %1164 = vrot.lane.b32.xlu0 %v1010_v6, %s2403_s23  ;;  %s1808_s23 = sshll.u32 %s681_s28, 3 }
 0x303   : > { %s683_s2 = scalar_lea.vmem [#allocation17], %s1808_s23  ;;  %s2302_s23 = scalar_lea.vmem %s2301_s27, 256 }
 0x35e   : > { %v883_v7 = vpop.permute.xlu1 %882 }
 0x35f   : > { %v886_v9 = vsel %vm885_vm5, %v869_v61, %v883_v7 }
 0x360   : > { %v887_v10 = vpack.c.bf16 %v886_v9, %v886_v9 }
 0x362   : > { %889 = vst.msk [vmem:[#allocation3] sm:$0xf] %vm888_vm3, %v887_v10  ;;  %v894_v11 = vpop.permute.xlu0 %893 }
 0x363   : > { %v896_v12 = vsel %vm885_vm5, %v894_v11, %v880_v58 }
 0x364   : > { %v897_v13 = vpack.c.bf16 %v896_v12, %v896_v12 }
 0x366   : > { %899 = vst.msk [vmem:[#allocation3 + $0x4] sm:$0xf] %vm888_vm3, %v897_v13 }
 0x368   : > { %v1020_v14 = vpop.permute.xlu1 %1019 }
 0x369   : > { %v1029_v15 = vld [vmem:[#allocation3] sm:$0xf]  ;;  %v1023_v17 = vsel %vm885_vm5, %v1020_v14, %v1010_v6 }
 0x36a   : > { %v1034_v16 = vsel %vm1030_vm6, %v1029_v15, 0  ;;  %v1025_v22 = vrot.slane %v1023_v17, 4 }
 0x36b   : > { %1915 = vmatpush3.bf16.xpose.msra.mxu1 %v1034_v16 }
 0x36c   : > { %v1013_v19 = vpop.permute.xlu0 %1012  ;;  %1926 = vmatprep.subr.bf16.mxu1 %v2396_v8  ;;  %v1170_v23 = vpop.permute.xlu1 %1169 }
 0x36d   : > { %v1017_v21 = vsel %vm885_vm5, %v998_v2, %v1013_v19  ;;  %v1181_v24 = vld [vmem:[#allocation3 + $0x4] sm:$0xf] }
 0x36e   : > { %v1028_v26 = vsel %vm1026_vm4, %v1017_v21, %v1025_v22  ;;  %v1185_v27 = vsel %vm1030_vm6, %v1181_v24, 0 }
 0x370   : > { %v1172_v25 = vpop.permute.xlu0 %1171  ;;  %v1163_v30 = vpop.permute.xlu1 %1162 }
 0x371   : > { %v1175_v28 = vsel %vm885_vm5, %v1170_v23, %v1172_v25 }
 0x372   : > { %1917 = vmatmul.mubr.msk.bf16.vlgmr.msra.gmra.mxu1 %vm1030_vm6, %v1028_v26  ;;  %v1177_v32 = vrot.slane %v1175_v28, 4  ;;  %v2106_v26 = vld [vmem:[%s2901_s11 + $0x8] sm:$0xff]  }
 0x373   : > { %1927 = vmatpush3.bf16.xpose.msra.mxu1 %v1185_v27  ;;  %1928 = vmatprep.mubr.msk.bf16.mxu1 %vm2397_vm1, %v2396_v8 }
 0x374   : > { %v1165_v29 = vpop.permute.xlu0 %1164  ;;  %1938 = vmatprep.subr.bf16.mxu1 %v2396_v8 }
 0x375   : > { %v1168_v31 = vsel %vm885_vm5, %v1163_v30, %v1165_v29  ;;  %v2107_v29 = vld [vmem:[%s2901_s11] sm:$0xff]  }
 0x376   : > { %v1179_v33 = vsel %vm1026_vm4, %v1168_v31, %v1177_v32 }
 0x37a   : > { %1929 = vmatmul.mubr.msk.bf16.vlgmr.msra.gmra.mxu1 %vm1030_vm6, %v1179_v33 }
 0x37b   : > { %1942 = vmatprep.mubr.msk.bf16.mxu1 %vm2397_vm1, %v2396_v8  ;;  %1939 = vmatpush3.bf16.msra.mxu1 %v2106_v26 }
 0x37c   : > { %1940 = vmatprep.subr.bf16.mxu1 %v2396_v8 }
 0x37f   : > { %1941 = vmatpush3.bf16.msra.mxu1 %v2107_v29  ;;  %v1843_v29 = vld [vmem:[%s2908_s18] ss:$0 sm:$0xff] }
 0x380   : > { %1954 = vmatprep.subr.bf16.mxu1 %v2396_v8 }
 0x432   : > { %v1070_v34 = vpop.f32.mrf.mxu1 }
 0x433   : > { %v1077_v35 = vmul.f32 0.35355338, %v1070_v34 }
 0x434   : > { %v1918_v36 = vpop.f32.mrf.mxu1 }
 0x435   : > { %v1079_v37 = vsel %vm1030_vm6, %v1077_v35, -inf }
 0x436   : > { %1080 = vmax.xlane.f32.xlu1 %v1079_v37  ;;  %v1073_v38 = vpop.f32.mrf.mxu1 }
 0x437   : > { %v1078_v39 = vmul.f32 0.35355338, %v1073_v38 }
 0x438   : > { %v1919_v40 = vpop.f32.mrf.mxu1 }
 0x439   : > { %v1082_v41 = vsel %vm1030_vm6, %v1078_v39, -inf }
 0x43a   : > { %1083 = vmax.xlane.f32.xlu0 %v1082_v41  ;;  %v1221_v42 = vpop.f32.mrf.mxu1 }
 0x43b   : > { %v1228_v43 = vmul.f32 0.35355338, %v1221_v42 }
 0x43c   : > { %v1930_v44 = vpop.f32.mrf.mxu1 }
 0x43d   : > { %v1230_v45 = vsel %vm1030_vm6, %v1228_v43, -inf }
 0x43e   : > { %1231 = vmax.xlane.f32.xlu0 %v1230_v45  ;;  %v1224_v47 = vpop.f32.mrf.mxu1  ;;  %v1830_v45 = vld [vmem:[%s2902_s12] ss:$0 sm:$0xff] }
 0x43f   : > { %v1229_v48 = vmul.f32 0.35355338, %v1224_v47 }
 0x440   : > { %v1931_v49 = vpop.f32.mrf.mxu1 }
 0x441   : > { %v1233_v50 = vsel %vm1030_vm6, %v1229_v48, -inf }
 0x442   : > { %1234 = vmax.xlane.f32.xlu1 %v1233_v50 }
 0x454   : > { %903 = vrot.lane.b32.xlu0 %v2717_v46, %s2400_s22  ;;  %s2843_s22 = scalar_lea.hbm %s2952_s19, %s1850_s25 }
 0x4bf   : > { %v1081_v51 = vpop.xlane.xlu1 %1080 }
 0x4c0   : > { %v1085_v52 = vsub.f32 %v1077_v35, %v1081_v51 }
 0x4c2   : > { %v1087_v53 = vmul.f32 1.442695, %v1085_v52 }
 0x4c3   : > { %v1084_v54 = vpop.xlane.xlu0 %1083 }
 0x4c4   : > { %v1086_v55 = vsub.f32 %v1078_v39, %v1084_v54  ;;  %2118 = vpow2.f32 %v1087_v53 }
 0x4c6   : > { %v1089_v56 = vmul.f32 1.442695, %v1086_v55 }
 0x4c7   : > { %v1232_v57 = vpop.xlane.xlu0 %1231 }
 0x4c8   : > { %2120 = vpow2.f32 %v1089_v56  ;;  %v1236_v58 = vsub.f32 %v1228_v43, %v1232_v57 }
 0x4ca   : > { %v1238_v59 = vmul.f32 1.442695, %v1236_v58 }
 0x4cb   : > { %v904_v60 = vpop.permute.xlu0 %903  ;;  %v1235_v61 = vpop.xlane.xlu1 %1234 }
 0x4cc   : > { %2122 = vpow2.f32 %v1238_v59  ;;  %907 = vst.msk [vmem:[#allocation4 + $0x4] sm:$0xf] %vm888_vm3, %v904_v60  ;;  %v1237_v62 = vsub.f32 %v1229_v48, %v1235_v61  ;;  %v2108_v59 = vld [vmem:[%s2903_s13 + $0x8] sm:$0xff]   ;;  %v2110_v60 = vld [vmem:[%s2903_s13] sm:$0xff]  }
 0x4cd   : > { %v2111_v61 = vld [vmem:[%s2905_s15] sm:$0xff]  }
 0x4ce   : > { %v1240_v63 = vmul.f32 1.442695, %v1237_v62 }
 0x4d0   : > { %2124 = vpow2.f32 %v1240_v63 }
 0x4d1   : > { %v2119_v46 = vpop.eup %2118 }
 0x4d2   : > { %v1091_v12 = vsel %vm1030_vm6, %v2119_v46, 0.0 }
 0x4d3   : > { %v1250_v2 = vld [vmem:[#allocation4 + $0x4] sm:$0xf] }
 0x4d4   : > { %v1255_v5 = vsel %vm1026_vm4, %v1250_v2, 0 }
 0x4d5   : > { %v2121_v1 = vpop.eup %2120 }
 0x4d6   : > { %v1094_v3 = vsel %vm1030_vm6, %v2121_v1, 0.0  ;;  %v1097_v4 = vpack.c.bf16 %v2121_v1, %v2119_v46 }
 0x4d7   : > { %1095 = vadd.xlane.f32.xlu1 %v1094_v3 }
 0x4d8   : > { %1923 = vmatmul.mubr.msk.bf16.vlgmr.msra.gmra.mxu0 %vm1030_vm6, %v1097_v4 }
 0x4d9   : > { %v2123_v6 = vpop.eup %2122  ;;  %1933 = vmatpush3.bf16.msra.mxu0 %v1255_v5  ;;  %1934 = vmatprep.mubr.msk.bf16.mxu0 %vm2397_vm1, %v2396_v8 }
 0x4da   : > { %v1242_v7 = vsel %vm1030_vm6, %v2123_v6, 0.0  ;;  %1946 = vmatprep.subr.bf16.mxu0 %v2396_v8 }
 0x4db   : > { %1243 = vadd.xlane.f32.xlu1 %v1242_v7  ;;  %v2115_v7 = vld [vmem:[%s2907_s17] sm:$0xff]  }
 0x4dd   : > { %v2125_v9 = vpop.eup %2124 }
 0x4de   : > { %v1245_v10 = vsel %vm1030_vm6, %v2125_v9, 0.0  ;;  %v1248_v11 = vpack.c.bf16 %v2125_v9, %v2123_v6  ;;  %v2112_v6 = vld [vmem:[%s2907_s17 + $0x18] sm:$0xff]   ;;  %v1838_v9 = vld [vmem:[%s2906_s16] ss:$0 sm:$0xff] }
 0x4df   : > { %1246 = vadd.xlane.f32.xlu1 %v1245_v10 }
 0x4e0   : > { %1935 = vmatmul.mubr.msk.bf16.vlgmr.msra.gmra.mxu0 %vm1030_vm6, %v1248_v11 }
 0x4e1   : > { %1950 = vmatprep.mubr.msk.bf16.mxu0 %vm2397_vm1, %v2396_v8  ;;  %1947 = vmatpush3.bf16.msra.mxu0 %v2108_v59 }
 0x4e2   : > { %1948 = vmatprep.subr.bf16.mxu0 %v2396_v8 }
 0x4e3   : > { %1092 = vadd.xlane.f32.xlu1 %v1091_v12 }
 0x4e5   : > { %1949 = vmatpush3.bf16.msra.mxu0 %v2110_v60 }
 0x4e6   : > { %1962 = vmatprep.subr.bf16.mxu0 %v2396_v8 }
 0x560   : > { %v1096_v13 = vpop.xlane.xlu1 %1095 }
 0x564   : > { %v1244_v14 = vpop.xlane.xlu1 %1243 }
 0x568   : > { %v1247_v15 = vpop.xlane.xlu1 %1246 }
 0x56c   : > { %v1093_v16 = vpop.xlane.xlu1 %1092 }
 0x56d   : > { %2126 = vrcp.f32 %v1093_v16 }
 0x56e   : > { %2128 = vrcp.f32 %v1096_v13 }
 0x56f   : > { %2130 = vrcp.f32 %v1244_v14 }
 0x570   : > { %2132 = vrcp.f32 %v1247_v15 }
 0x57a   : > { %v2127_v17 = vpop.eup %2126 }
 0x57b   : > { %v2129_v24 = vpop.eup %2128 }
 0x57c   : > { %v2131_v31 = vpop.eup %2130 }
 0x57d   : > { %v2133_v36 = vpop.eup %2132 }
 0x598   : > { %v1139_v19 = vpop.f32.mrf.mxu0 }
 0x599   : > { %v1148_v21 = vmul.f32 %v2127_v17, %v1139_v19 }
 0x59a   : > { %v1924_v22 = vpop.f32.mrf.mxu0 }
 0x59b   : > { %v1150_v23 = vpack.c.bf16 %v1148_v21, %v1148_v21 }
 0x59c   : > { %v1142_v25 = vpop.f32.mrf.mxu0 }
 0x59d   : > { %1152 = vst.msk [vmem:[#allocation5] sm:$0xf] %vm888_vm3, %v1150_v23  ;;  %v1149_v27 = vmul.f32 %v2129_v24, %v1142_v25  ;;  %v1834_v23 = vld [vmem:[%s2904_s14] ss:$0 sm:$0xff] }
 0x59e   : > { %v1925_v28 = vpop.f32.mrf.mxu0 }
 0x59f   : > { %v1854_v30 = vpack.c.bf16 %v1149_v27, %v1149_v27 }
 0x5a0   : > { %v1291_v32 = vpop.f32.mrf.mxu0 }
 0x5a1   : > { %v1300_v33 = vmul.f32 %v2131_v31, %v1291_v32  ;;  %1157 = vrot.lane.b32.xlu1 %v1854_v30, %s2398_s26 }
 0x5a2   : > { %v1936_v34 = vpop.f32.mrf.mxu0 }
 0x5a3   : > { %v1855_v35 = vpack.c.bf16 %v1300_v33, %v1300_v33 }
 0x5a4   : > { %v1294_v37 = vpop.f32.mrf.mxu0 }
 0x5a5   : > { %v1301_v38 = vmul.f32 %v2133_v36, %v1294_v37  ;;  %1306 = vrot.lane.b32.xlu0 %v1855_v35, %s2399_s29 }
 0x5a6   : > { %v1937_v39 = vpop.f32.mrf.mxu0 }
 0x5a7   : > { %v1856_v40 = vpack.c.bf16 %v1301_v38, %v1301_v38 }
 0x5a9   : > { %1315 = vrot.lane.b32.xlu0 %v1856_v40, %s2405_s20  ;;  %s1655_s20 = sshll.u32 %s683_s2, 4  ;;  %s2845_s20 = int_to_ptr.vmem [resolvable:$true] %s1655_s20 }
 0x5aa   : > { %s2296_s0 = scalar_lea.vmem %s2845_s20, 128  ;;  %p2303_p12 = scmp.lt.s32.totalorder %s2845_s20, %s2301_s27 }
 0x5ab   : > { %p2297_p0 = scmp.ne.s32.totalorder %s2845_s20, %s2296_s0  ;;  %p2304_p1 = scmp.lt.s32.totalorder %s2302_s23, %s2296_s0 }
 0x5ad   : > { %p2298_p7 = pnand %p2297_p0, %p2953_p11  ;;  %p2305_p2 = por %p2304_p1, %p2303_p12 }
 0x5af   : > { %p2299_p9 = pneg %p2298_p7 }
 0x5b1   : > { %p2306_p8 = pnand %p2305_p2, %p2299_p9 }
 0x613   : > { %v1158_v41 = vpop.permute.xlu1 %1157 }
 0x614   : > { %1161 = vst.msk [vmem:[#allocation5] sm:$0xf] %vm1160_vm7, %v1158_v41 }
 0x617   : > { %v1307_v42 = vpop.permute.xlu0 %1306 }
 0x618   : > { %1310 = vst.msk [vmem:[#allocation5] sm:$0xf] %vm1309_vm8, %v1307_v42 }
 0x61b   : > { %v1316_v43 = vpop.permute.xlu0 %1315 }
 0x61c   : > { %1319 = vst.msk [vmem:[#allocation5] sm:$0xf] %vm1318_vm9, %v1316_v43 }
 0x623   : > { %v1320_v44 = vld [vmem:[#allocation5] sm:$0xf] }
 0x624   : > { %1943 = vmatmul.mubr.msk.bf16.vlgmr.msra.gmra.mxu1 %vm696_vm0, %v1320_v44 }
 0x625   : > { %1958 = vmatprep.mubr.msk.bf16.mxu1 %vm2397_vm1, %v2396_v8 }
 0x6e4   : > { %v1381_v47 = vpop.f32.mrf.mxu1 }
 0x6e5   : > { %v1382_v48 = vadd.f32 %v1830_v45, %v1381_v47 }
 0x6e6   : > { %v1944_v49 = vpop.f32.mrf.mxu1 }
 0x6e7   : > { %v2786_v50 = vadd.f32 %v1382_v48, %v2649_v0  ;;  %v2109_v0 = vld [vmem:[%s2905_s15 + $0x8] sm:$0xff]  }
 0x6e8   : > { %v1384_v51 = vpop.f32.mrf.mxu1  ;;  %1955 = vmatpush3.bf16.msra.mxu1 %v2109_v0 }
 0x6e9   : > { %v1388_v52 = vsel %vm696_vm0, %v2786_v50, 0.0  ;;  %1956 = vmatprep.subr.bf16.mxu1 %v2396_v8 }
 0x6ea   : > { %1389 = vadd.xlane.f32.xlu0 %v1388_v52  ;;  %v1945_v53 = vpop.f32.mrf.mxu1 }
 0x6ec   : > { %1957 = vmatpush3.bf16.msra.mxu1 %v2111_v61 }
 0x773   : > { %v1390_v54 = vpop.xlane.xlu0 %1389 }
 0x774   : > { %v1392_v55 = vmul.f32 0.03125, %v1390_v54 }
 0x776   : > { %v1393_v56 = vsub.f32 %v2786_v50, %v1392_v55 }
 0x778   : > { %v1394_v57 = vmul.f32 %v1393_v56, %v1393_v56 }
 0x77a   : > { %v1395_v58 = vsel %vm696_vm0, %v1394_v57, 0.0 }
 0x77b   : > { %1396 = vadd.xlane.f32.xlu1 %v1395_v58 }
 0x804   : > { %v1397_v62 = vpop.xlane.xlu1 %1396 }
 0x805   : > { %v1398_v63 = vmul.f32 0.03125, %v1397_v62 }
 0x807   : > { %v1399_v46 = vadd.f32 1e-05, %v1398_v63 }
 0x809   : > { %2134 = vrsqrt.f32 %v1399_v46 }
 0x816   : > { %v2135_v1 = vpop.eup %2134 }
 0x817   : > { %v1401_v2 = vmul.f32 %v2135_v1, %v1393_v56 }
 0x819   : > { %v1408_v3 = vmul.f32 %v2689_v18, %v1401_v2  ;;  %v2113_v18 = vld [vmem:[%s2907_s17 + $0x10] sm:$0xff]  }
 0x81b   : > { %v1415_v4 = vadd.f32 %v2691_v20, %v1408_v3  ;;  %v2114_v20 = vld [vmem:[%s2907_s17 + $0x8] sm:$0xff]  }
 0x81d   : > { %v1416_v5 = vpack.c.bf16 %v1415_v4, %v1415_v4 }
 0x81f   : > { %1951 = vmatmul.mubr.msk.bf16.vlgmr.msra.gmra.mxu0 %vm696_vm0, %v1416_v5  ;;  %1959 = vmatmul.mubr.msk.bf16.vlgmr.msra.gmra.mxu1 %vm696_vm0, %v1416_v5 }
 0x820   : > { %1970 = vmatprep.mubr.msk.bf16.mxu0 %vm2397_vm1, %v2396_v8  ;;  %1963 = vmatpush3.bf16.msra.mxu0 %v2112_v6 }
 0x821   : > { %1964 = vmatprep.subr.bf16.mxu0 %v2396_v8 }
 0x824   : > { %1965 = vmatpush3.bf16.msra.mxu0 %v2113_v18 }
 0x825   : > { %1966 = vmatprep.subr.bf16.mxu0 %v2396_v8 }
 0x828   : > { %1967 = vmatpush3.bf16.msra.mxu0 %v2114_v20 }
 0x829   : > { %1968 = vmatprep.subr.bf16.mxu0 %v2396_v8 }
 0x82c   : > { %1969 = vmatpush3.bf16.msra.mxu0 %v2115_v7 }
 0x8df   : > { %v1477_v10 = vpop.f32.mrf.mxu0  ;;  %v1540_v11 = vpop.f32.mrf.mxu1 }
 0x8e0   : > { %v1541_v12 = vadd.f32 %v1838_v9, %v1540_v11  ;;  %v1478_v25 = vadd.f32 %v1834_v23, %v1477_v10 }
 0x8e1   : > { %v1952_v13 = vpop.f32.mrf.mxu0  ;;  %v1960_v14 = vpop.f32.mrf.mxu1 }
 0x8e2   : > { %v1842_v15 = vmul.f32 -1.442695, %v1541_v12 }
 0x8e3   : > { %v1480_v16 = vpop.f32.mrf.mxu0  ;;  %v1543_v17 = vpop.f32.mrf.mxu1 }
 0x8e4   : > { %2136 = vpow2.f32 %v1842_v15 }
 0x8e5   : > { %v1953_v8 = vpop.f32.mrf.mxu0  ;;  %v1961_v19 = vpop.f32.mrf.mxu1 }
 0x8f1   : > { %v2137_v21 = vpop.eup %2136 }
 0x8f2   : > { %v1549_v22 = vadd.f32 1.0, %v2137_v21 }
 0x8f4   : > { %2138 = vrcp.f32 %v1549_v22 }
 0x901   : > { %v2139_v24 = vpop.eup %2138 }
 0x902   : > { %v1552_v26 = vmul.f32 %v2139_v24, %v1541_v12 }
 0x904   : > { %v1553_v27 = vmul.f32 %v1552_v26, %v1478_v25 }
 0x906   : > { %v1554_v28 = vpack.c.bf16 %v1553_v27, %v1553_v27 }
 0x908   : > { %1971 = vmatmul.mubr.msk.bf16.vlgmr.msra.gmra.mxu0 %vm1594_vm10, %v1554_v28 }
 0x9c8   : > { %v1632_v30 = vpop.f32.mrf.mxu0 }
 0x9c9   : > { %v1633_v31 = vadd.f32 %v1843_v29, %v1632_v30 }
 0x9ca   : > { %v1972_v32 = vpop.f32.mrf.mxu0 }
 0x9cb   : > { %v1638_v33 = vadd.f32 %v1633_v31, %v2786_v50 }
 0x9cc   : > { %v1635_v34 = vpop.f32.mrf.mxu0 }
 0x9cd   : > { %1639 = vst.msk [vmem:[%s683_s2] sm:$0xff] %vm696_vm0, %v1638_v33 }
 0x9ce   : > { %v1973_v35 = vpop.f32.mrf.mxu0 }
 0x9cf   : > { %2309 = shalt.err (!%p2306_p8)
}
 0x9d0   : > { %s2310_s3 = scalar_lea.hbm %s2843_s22, 128  ;;  %s2314_s25 = scalar_lea.hbm %s2952_s19, 256 }
 0x9d1   : > { %p2311_p3 = scmp.ne.s32.totalorder %s2843_s22, %s2310_s3  ;;  %p2315_p4 = scmp.lt.s32.totalorder %s2843_s22, %s2952_s19 }
 0x9d2   : > { %p2316_p10 = scmp.lt.s32.totalorder %s2314_s25, %s2310_s3 }
 0x9d3   : > { %p2312_p5 = pnand %p2311_p3, %p2953_p11 }
 0x9d4   : > { %p2317_p13 = por %p2316_p10, %p2315_p4 }
 0x9d5   : > { %p2313_p6 = pneg %p2312_p5 }
 0x9d7   : > { %p2318_p0 = pnand %p2317_p13, %p2313_p6 }
 0x9d9   : > { %2321 = shalt.err (!%p2318_p0)
}
 0x9da   : > { %1998 = dma.vmem_to_hbm [thread:$0]  (%p2953_p11), %s2845_s20, 128, %s2843_s22, %s1641_s21  }
 0x9db PF: > { %s2954_s29 = sld [smem:[#allocation26_spill]] }
 0x9dc   : > { %s2955_s0 = sld [smem:[#allocation23_spill]] }
 0x9dd   : > { %s2956_s1 = sld [smem:[#allocation29_spill]] }
 0x9e1   : > { %p2035_p7 = scmp.ge.s32.totalorder %s2954_s29, 2 }
 0x9e2   : > { %s1667_s27 = sand.u32 1, %s2955_s0  }
 0x9e3   : > { %p2957_p9 = scmp.ne.s32.totalorder %s2956_s1, 0  ;;  %s1668_s23 = scalar_lea.sflag [#allocation8], %s1667_s27 }
 0x9e5   : > { %p2020_p12 = pnand %p2035_p7, %p2957_p9 }
 0x9e7   : > { %p2021_p1 = pneg %p2020_p12 }
 0x9e9   : > { %2363 = dma.done.wait (%p2021_p1), %s1668_s23, 128  }
 0x9ea   : > { %2365 = vsyncadd (%p2021_p1), %s1668_s23, 4294967168  ;;  %s36_s22 = sadd.s32 1, %s2954_s29   ;;  %s2958_s4 = sld [smem:[#allocation24_spill]] }
 0x9eb   : > { %p33_p2 = scmp.ge.s32.totalorder %s36_s22, 4   ;;  %s2959_s20 = sld [smem:[#allocation30_spill]] }
 0x9ec   : > { %s2960_s21 = sld [smem:[#allocation25_spill]]  ;;  %s2962_s0 = smov %s2372_s30 }
 0x9ed   : > { %s2961_s1 = sld [smem:[#allocation27_spill]]  ;;  %35 = sbr.rel (!%p33_p2) target bundleno = 15 (0xf), region = 168 }
 0x9f0   : > { %s2963_s30 = smov %s2958_s4 }
 0x9f2   :  { %1673 = vsyncpa [#allocation7], 1 }
 0x9f3   :  { %1675 = vsyncpa [#allocation7 + $0x1], 1 }
 0x9f4   :  { %1676 = vsyncpa [#allocation10], 1 }
 0x9f5   :  { %1677 = vsyncpa [#allocation13], 1 }
 0x9f6   :  { %1678 = vsyncpa [#allocation16], 1 }
 0x9f7   :  { %1679 = vsyncpa [#allocation8], 1 }
 0x9f8   :  { %1681 = vsyncpa [#allocation8 + $0x1], 1 }

</bundles_post_ra>
